<compile_context>
chip_gen: v7x
topology: tpu7x:2x2x1
jax: 0.10.0
libtpu: 0.0.40
codegen_flags: <defaults>
</compile_context>

<pallas_src>
import functools

import jax
import jax.numpy as jnp
from jax.experimental import pallas as pl
from jax.experimental.pallas import tpu as pltpu


# ---------------------------------------------------------------------------
# Fused multi-stage kernel (one grid step == one batch element, all stages)
# ---------------------------------------------------------------------------

def _mstcn_kernel(n_layers, n_stages, n_classes, x_ref, *refs):
    """Whole MultiStageTCN eval forward for one batch element.

    x_ref : (1, T, Cin) f32   input block (time on sublanes, channels on lanes)
    refs  : 8 * n_stages weight refs (stage1 first), then o_ref.
            Per stage: w_in (Cin,F) bf16, b_in (1,F) f32,
                       w_dil (L,3F,F) bf16, b_dil (L,1,F) f32,
                       w_pw (L,F,F) bf16,  b_pw (L,1,F) f32,
                       w_out (F,C) bf16,   b_out (1,C) f32
    o_ref : (1, T, C) f32     last-stage logits (no activation on last stage)
    """
    o_ref = refs[-1]
    w_refs = refs[:-1]

    x = x_ref[0]                                           # (T, Cin) f32
    T = x.shape[0]
    t_idx = jax.lax.broadcasted_iota(jnp.int32, (T, 1), 0)

    def mm(a, w):                                          # bf16 MXU, f32 accum
        return jnp.dot(a.astype(jnp.bfloat16), w,
                       preferred_element_type=jnp.float32)

    def run_stage(inp, w_in, b_in, w_dil, b_dil, w_pw, b_pw, w_out, b_out):
        feat = mm(inp, w_in[...]) + b_in[...]              # conv_in (1x1)
        # TODO(synk): for production n_layers≈10, switch this static unroll to
        # lax.fori_loop (dynamic w_dil_ref[i] + dynamic-shift roll) to bound
        # live ranges / VMEM pressure on v7x's 64 MiB VMEM.
        for i in range(n_layers):                          # d = 2**i, d < T
            d = 2 ** i
            # Halo via XLU roll; iota masks zero the wrapped rows, which
            # reproduces Conv1d's zero padding at the sequence boundaries.
            left = jnp.where(t_idx >= d,
                             pltpu.roll(feat, shift=d, axis=0), 0.0)
            right = jnp.where(t_idx < T - d,
                              pltpu.roll(feat, shift=T - d, axis=0), 0.0)
            # Single MXU call for all three taps: (T, 3F) @ (3F, F).
            taps = jnp.concatenate([left, feat, right], axis=1)
            h = jnp.maximum(mm(taps, w_dil[i]) + b_dil[i], 0.0)   # ReLU
            feat = feat + mm(h, w_pw[i]) + b_pw[i]                # residual
        return mm(feat, w_out[...]) + b_out[...]           # conv_out (1x1)

    out = run_stage(x, *w_refs[0:8])
    for s in range(1, n_stages):                           # activation in VMEM
        if n_classes == 1:
            act = jax.nn.sigmoid(out)
        else:                                              # softmax over C
            m = jnp.max(out, axis=-1, keepdims=True)
            e = jnp.exp(out - m)
            act = e * pl.reciprocal(jnp.sum(e, axis=-1, keepdims=True),
                                    approx=True)
        out = run_stage(act, *w_refs[8 * s:8 * (s + 1)])

    o_ref[0] = out.astype(o_ref.dtype)


# ---------------------------------------------------------------------------
# One-time weight packing (hoisted out of the jitted forward)
# ---------------------------------------------------------------------------

def prepack_stage(stage_params, mxu_dtype=jnp.bfloat16):
    """Pack one SingleStageTCN's weights into the kernel's matmul layout."""
    w_in, b_in = stage_params["conv_in"]
    n_features = w_in.shape[0]
    layers = stage_params["layers"]
    w_out, b_out = stage_params["conv_out"]
    n_out = w_out.shape[0]

    w_in_k = w_in[:, :, 0].T.astype(mxu_dtype)                        # (Cin, F)
    b_in_k = b_in.reshape(1, n_features).astype(jnp.float32)
    w_dil = jnp.stack([
        jnp.concatenate([wd[:, :, 0].T, wd[:, :, 1].T, wd[:, :, 2].T], axis=0)
        for (wd, _, _, _) in layers]).astype(mxu_dtype)               # (L,3F,F)
    b_dil = jnp.stack([bd.reshape(1, n_features)
                       for (_, bd, _, _) in layers]).astype(jnp.float32)
    w_pw = jnp.stack([wi[:, :, 0].T
                      for (_, _, wi, _) in layers]).astype(mxu_dtype)  # (L,F,F)
    b_pw = jnp.stack([bi.reshape(1, n_features)
                      for (_, _, _, bi) in layers]).astype(jnp.float32)
    w_out_k = w_out[:, :, 0].T.astype(mxu_dtype)                      # (F, C)
    b_out_k = b_out.reshape(1, n_out).astype(jnp.float32)
    return (w_in_k, b_in_k, w_dil, b_dil, w_pw, b_pw, w_out_k, b_out_k)


def prepack_multi_stage(params):
    packed = list(prepack_stage(params["stage1"]))
    for sp in params["stages"]:
        packed += list(prepack_stage(sp))
    return tuple(packed)


# ---------------------------------------------------------------------------
# Forward (eval mode) — single fused pallas_call
# ---------------------------------------------------------------------------

def _const_index_map(ndim):
    return lambda b: (0,) * ndim       # weights: same block every grid step


@functools.partial(jax.jit, static_argnames=("n_classes", "n_layers", "n_stages"))
def multi_stage_tcn_forward(packed, x_nct, n_classes, n_layers, n_stages):
    """MultiStageTCN eval forward. x_nct: (B, C_in, T) -> (B, n_classes, T)."""
    B, cin, T = x_nct.shape
    assert 2 ** (n_layers - 1) < T, "largest dilation halo must fit inside T"
    n_features = packed[0].shape[1]

    # NCT -> (B, T, C): time on sublanes, channels on lanes (tiny XLA op).
    x = jnp.transpose(x_nct, (0, 2, 1)).astype(jnp.float32)

    # Explicit scoped-VMEM budget (defaults are 16/32 MiB, far below physical).
    weight_bytes = sum(int(w.size) * w.dtype.itemsize for w in packed)
    act_bytes = T * 4 * (cin + 10 * n_features + 2 * n_classes)
    vmem_limit = int(min(max(4 * act_bytes + 2 * weight_bytes + (8 << 20),
                             32 << 20), 64 << 20))

    kernel = functools.partial(_mstcn_kernel, n_layers, n_stages, n_classes)
    in_specs = [pl.BlockSpec((1, T, cin), lambda b: (b, 0, 0))]
    in_specs += [pl.BlockSpec(w.shape, _const_index_map(w.ndim)) for w in packed]

    out = pl.pallas_call(
        kernel,
        out_shape=jax.ShapeDtypeStruct((B, T, n_classes), jnp.float32),
        grid=(B,),
        in_specs=in_specs,
        out_specs=pl.BlockSpec((1, T, n_classes), lambda b: (b, 0, 0)),
        compiler_params=pltpu.CompilerParams(
            dimension_semantics=("parallel",),
            vmem_limit_bytes=vmem_limit),
    )(x, *packed)

    # TODO(synk): for production-sized T (thousands of frames, L≈10, F=64)
    # tile the time axis with a 2**(n_layers-1) halo per block — whole-sequence
    # residency is the limiting factor on v7x's 64 MiB VMEM.
    return jnp.transpose(out, (0, 2, 1))


# ---------------------------------------------------------------------------
# Parameter init (deterministic, mimics nn.Conv1d default init shapes)
# ---------------------------------------------------------------------------

def conv1d_params(key, cin, cout, ksize):
    kw, kb = jax.random.split(key)
    bound = 1.0 / float(cin * ksize) ** 0.5
    w = jax.random.uniform(kw, (cout, cin, ksize), jnp.float32, -bound, bound)
    b = jax.random.uniform(kb, (cout,), jnp.float32, -bound, bound)
    return w, b


def init_stage(key, in_channel, n_features, n_classes, n_layers):
    keys = jax.random.split(key, 2 * n_layers + 2)
    params = {
        "conv_in": conv1d_params(keys[0], in_channel, n_features, 1),
        "layers": [],
        "conv_out": conv1d_params(keys[-1], n_features, n_classes, 1),
    }
    for i in range(n_layers):
        wd, bd = conv1d_params(keys[1 + 2 * i], n_features, n_features, 3)
        wi, bi = conv1d_params(keys[2 + 2 * i], n_features, n_features, 1)
        params["layers"].append((wd, bd, wi, bi))
    return params


def init_multi_stage(key, in_channel, n_features, n_classes, n_stages, n_layers):
    keys = jax.random.split(key, n_stages)
    return {
        "stage1": init_stage(keys[0], in_channel, n_features, n_classes, n_layers),
        "stages": [
            init_stage(keys[s], n_classes, n_features, n_classes, n_layers)
            for s in range(1, n_stages)
        ],
    }


# ---------------------------------------------------------------------------
# Pure-JAX f32 reference (correctness check only)
# ---------------------------------------------------------------------------

def _ref_stage(params, x, mask):
    w, b = params["conv_in"]
    feat = x @ w[:, :, 0].T + b
    for i, (wd, bd, wi, bi) in enumerate(params["layers"]):
        d = 2 ** i
        xp = jnp.pad(feat, ((0, 0), (d, d), (0, 0)))
        T = feat.shape[1]
        h = (xp[:, 0:T] @ wd[:, :, 0].T + xp[:, d:d + T] @ wd[:, :, 1].T
             + xp[:, 2 * d:2 * d + T] @ wd[:, :, 2].T + bd)
        h = jnp.maximum(h, 0.0)
        out = h @ wi[:, :, 0].T + bi
        feat = (feat + out) * mask
    w, b = params["conv_out"]
    return (feat @ w[:, :, 0].T + b) * mask


def _ref_forward(params, x_nct, n_classes):
    x = jnp.transpose(x_nct, (0, 2, 1))
    mask = jnp.ones(x.shape[:2] + (1,), jnp.float32)
    out = _ref_stage(params["stage1"], x, mask)
    for sp in params["stages"]:
        act = jax.nn.sigmoid(out) if n_classes == 1 else jax.nn.softmax(out, axis=-1)
        out = _ref_stage(sp, act, mask)
    return jnp.transpose(out, (0, 2, 1))


# ---------------------------------------------------------------------------
# Main
# ---------------------------------------------------------------------------

if __name__ == "__main__":
    B, IN_CH, T = 2, 8, 64
    N_FEATURES, N_CLASSES, N_STAGES, N_LAYERS = 32, 8, 2, 3

    key = jax.random.PRNGKey(0)
    k_param, k_x = jax.random.split(key)
    params = init_multi_stage(k_param, IN_CH, N_FEATURES, N_CLASSES,
                              N_STAGES, N_LAYERS)
    packed = prepack_multi_stage(params)      # one-time weight packing
    x = jax.random.normal(k_x, (B, IN_CH, T), jnp.float32)   # PyTorch NCT

    out = multi_stage_tcn_forward(packed, x, n_classes=N_CLASSES,
                                  n_layers=N_LAYERS, n_stages=N_STAGES)
    out = jax.block_until_ready(out)
    assert out.shape == (B, N_CLASSES, T)

    ref = jax.block_until_ready(_ref_forward(params, x, N_CLASSES))
    # bf16 MXU operands (f32 accumulation) vs. the f32 reference -> relax
    # tolerance slightly beyond the f32-only 1e-3.
    max_err = float(jnp.max(jnp.abs(out - ref)))
    assert jnp.allclose(out, ref, rtol=3e-2, atol=3e-2), (
        f"mismatch vs. JAX reference (max abs err {max_err:.2e})")

    print("KERNEL_OK")
</pallas_src>

<mosaic_0001>
module attributes {stable_mosaic.version = 11 : i64} {
  func.func @_mstcn_kernel(%arg0: i32, %arg1: memref<1x64x8xf32, #tpu.memory_space<vmem>>, %arg2: memref<8x32xbf16, #tpu.memory_space<vmem>>, %arg3: memref<1x32xf32, #tpu.memory_space<vmem>>, %arg4: memref<3x96x32xbf16, #tpu.memory_space<vmem>>, %arg5: memref<3x1x32xf32, #tpu.memory_space<vmem>>, %arg6: memref<3x32x32xbf16, #tpu.memory_space<vmem>>, %arg7: memref<3x1x32xf32, #tpu.memory_space<vmem>>, %arg8: memref<32x8xbf16, #tpu.memory_space<vmem>>, %arg9: memref<1x8xf32, #tpu.memory_space<vmem>>, %arg10: memref<8x32xbf16, #tpu.memory_space<vmem>>, %arg11: memref<1x32xf32, #tpu.memory_space<vmem>>, %arg12: memref<3x96x32xbf16, #tpu.memory_space<vmem>>, %arg13: memref<3x1x32xf32, #tpu.memory_space<vmem>>, %arg14: memref<3x32x32xbf16, #tpu.memory_space<vmem>>, %arg15: memref<3x1x32xf32, #tpu.memory_space<vmem>>, %arg16: memref<32x8xbf16, #tpu.memory_space<vmem>>, %arg17: memref<1x8xf32, #tpu.memory_space<vmem>>, %arg18: memref<1x64x8xf32, #tpu.memory_space<vmem>>) attributes {dimension_semantics = [#tpu.dimension_semantics<parallel>], iteration_bounds = array<i64: 2>, scalar_prefetch = 0 : i64, scratch_operands = 0 : i64, tpu.core_type = #tpu.core_type<tc>, window_params = [{transform_indices = @transform_0, window_bounds = array<i64: 1, 64, 8>}, {pipeline_mode = #tpu.pipeline_mode<synchronous>, transform_indices = @transform_1, window_bounds = array<i64: 8, 32>}, {pipeline_mode = #tpu.pipeline_mode<synchronous>, transform_indices = @transform_2, window_bounds = array<i64: 1, 32>}, {pipeline_mode = #tpu.pipeline_mode<synchronous>, transform_indices = @transform_3, window_bounds = array<i64: 3, 96, 32>}, {pipeline_mode = #tpu.pipeline_mode<synchronous>, transform_indices = @transform_4, window_bounds = array<i64: 3, 1, 32>}, {pipeline_mode = #tpu.pipeline_mode<synchronous>, transform_indices = @transform_5, window_bounds = array<i64: 3, 32, 32>}, {pipeline_mode = #tpu.pipeline_mode<synchronous>, transform_indices = @transform_6, window_bounds = array<i64: 3, 1, 32>}, {pipeline_mode = #tpu.pipeline_mode<synchronous>, transform_indices = @transform_7, window_bounds = array<i64: 32, 8>}, {pipeline_mode = #tpu.pipeline_mode<synchronous>, transform_indices = @transform_8, window_bounds = array<i64: 1, 8>}, {pipeline_mode = #tpu.pipeline_mode<synchronous>, transform_indices = @transform_9, window_bounds = array<i64: 8, 32>}, {pipeline_mode = #tpu.pipeline_mode<synchronous>, transform_indices = @transform_10, window_bounds = array<i64: 1, 32>}, {pipeline_mode = #tpu.pipeline_mode<synchronous>, transform_indices = @transform_11, window_bounds = array<i64: 3, 96, 32>}, {pipeline_mode = #tpu.pipeline_mode<synchronous>, transform_indices = @transform_12, window_bounds = array<i64: 3, 1, 32>}, {pipeline_mode = #tpu.pipeline_mode<synchronous>, transform_indices = @transform_13, window_bounds = array<i64: 3, 32, 32>}, {pipeline_mode = #tpu.pipeline_mode<synchronous>, transform_indices = @transform_14, window_bounds = array<i64: 3, 1, 32>}, {pipeline_mode = #tpu.pipeline_mode<synchronous>, transform_indices = @transform_15, window_bounds = array<i64: 32, 8>}, {pipeline_mode = #tpu.pipeline_mode<synchronous>, transform_indices = @transform_16, window_bounds = array<i64: 1, 8>}, {transform_indices = @transform_17, window_bounds = array<i64: 1, 64, 8>}]} {
    %c0 = arith.constant 0 : index
    %c0_0 = arith.constant 0 : index
    %c0_1 = arith.constant 0 : index
    %0 = vector.load %arg1[%c0, %c0_0, %c0_1] : memref<1x64x8xf32, #tpu.memory_space<vmem>>, vector<1x64x8xf32>
    %1 = vector.shape_cast %0 : vector<1x64x8xf32> to vector<64x8xf32>
    %2 = tpu.iota {dimensions = array<i32: 0>} : vector<64x1xi32>
    %c0_2 = arith.constant 0 : index
    %c0_3 = arith.constant 0 : index
    %3 = vector.load %arg2[%c0_2, %c0_3] : memref<8x32xbf16, #tpu.memory_space<vmem>>, vector<8x32xbf16>
    %4 = arith.truncf %1 : vector<64x8xf32> to vector<64x8xbf16>
    %cst = arith.constant dense<0.000000e+00> : vector<64x32xf32>
    %5 = tpu.matmul %4, %3, %cst {dimension_numbers = #tpu.dot_dimension_numbers<[1], [0], [0], [1], [0, 0, 1, 1], [], []>} : vector<64x8xbf16>, vector<8x32xbf16>, vector<64x32xf32> -> vector<64x32xf32>
    %c0_4 = arith.constant 0 : index
    %c0_5 = arith.constant 0 : index
    %6 = vector.load %arg3[%c0_4, %c0_5] : memref<1x32xf32, #tpu.memory_space<vmem>>, vector<1x32xf32>
    %7 = vector.broadcast %6 : vector<1x32xf32> to vector<64x32xf32>
    %8 = arith.addf %5, %7 : vector<64x32xf32>
    %c1_i32 = arith.constant 1 : i32
    %9 = vector.broadcast %c1_i32 : i32 to vector<64x1xi32>
    %10 = arith.cmpi sge, %2, %9 : vector<64x1xi32>
    %c1_i32_6 = arith.constant 1 : i32
    %11 = tpu.dynamic_rotate %8 by %c1_i32_6 dim 0 : vector<64x32xf32>, i32 -> vector<64x32xf32>
    %cst_7 = arith.constant 0.000000e+00 : f32
    %12 = vector.shape_cast %10 : vector<64x1xi1> to vector<64x1xi1>
    %13 = vector.broadcast %12 : vector<64x1xi1> to vector<64x32xi1>
    %14 = vector.broadcast %cst_7 : f32 to vector<64x32xf32>
    %15 = arith.select %13, %11, %14 : vector<64x32xi1>, vector<64x32xf32>
    %c63_i32 = arith.constant 63 : i32
    %16 = vector.broadcast %c63_i32 : i32 to vector<64x1xi32>
    %17 = arith.cmpi slt, %2, %16 : vector<64x1xi32>
    %c63_i32_8 = arith.constant 63 : i32
    %18 = tpu.dynamic_rotate %8 by %c63_i32_8 dim 0 : vector<64x32xf32>, i32 -> vector<64x32xf32>
    %cst_9 = arith.constant 0.000000e+00 : f32
    %19 = vector.shape_cast %17 : vector<64x1xi1> to vector<64x1xi1>
    %20 = vector.broadcast %19 : vector<64x1xi1> to vector<64x32xi1>
    %21 = vector.broadcast %cst_9 : f32 to vector<64x32xf32>
    %22 = arith.select %20, %18, %21 : vector<64x32xi1>, vector<64x32xf32>
    %23 = tpu.concatenate %15, %8, %22 in 1 : vector<64x32xf32>, vector<64x32xf32>, vector<64x32xf32> -> vector<64x96xf32>
    %c0_10 = arith.constant 0 : index
    %c0_11 = arith.constant 0 : index
    %c0_12 = arith.constant 0 : index
    %24 = vector.load %arg4[%c0_10, %c0_11, %c0_12] : memref<3x96x32xbf16, #tpu.memory_space<vmem>>, vector<1x96x32xbf16>
    %25 = vector.shape_cast %24 : vector<1x96x32xbf16> to vector<96x32xbf16>
    %26 = arith.truncf %23 : vector<64x96xf32> to vector<64x96xbf16>
    %cst_13 = arith.constant dense<0.000000e+00> : vector<64x32xf32>
    %27 = tpu.matmul %26, %25, %cst_13 {dimension_numbers = #tpu.dot_dimension_numbers<[1], [0], [0], [1], [0, 0, 1, 1], [], []>} : vector<64x96xbf16>, vector<96x32xbf16>, vector<64x32xf32> -> vector<64x32xf32>
    %c0_14 = arith.constant 0 : index
    %c0_15 = arith.constant 0 : index
    %c0_16 = arith.constant 0 : index
    %28 = vector.load %arg5[%c0_14, %c0_15, %c0_16] : memref<3x1x32xf32, #tpu.memory_space<vmem>>, vector<1x1x32xf32>
    %29 = vector.shape_cast %28 : vector<1x1x32xf32> to vector<1x32xf32>
    %30 = vector.broadcast %29 : vector<1x32xf32> to vector<64x32xf32>
    %31 = arith.addf %27, %30 : vector<64x32xf32>
    %cst_17 = arith.constant 0.000000e+00 : f32
    %32 = vector.broadcast %cst_17 : f32 to vector<64x32xf32>
    %33 = arith.maximumf %31, %32 : vector<64x32xf32>
    %c0_18 = arith.constant 0 : index
    %c0_19 = arith.constant 0 : index
    %c0_20 = arith.constant 0 : index
    %34 = vector.load %arg6[%c0_18, %c0_19, %c0_20] : memref<3x32x32xbf16, #tpu.memory_space<vmem>>, vector<1x32x32xbf16>
    %35 = vector.shape_cast %34 : vector<1x32x32xbf16> to vector<32x32xbf16>
    %36 = arith.truncf %33 : vector<64x32xf32> to vector<64x32xbf16>
    %cst_21 = arith.constant dense<0.000000e+00> : vector<64x32xf32>
    %37 = tpu.matmul %36, %35, %cst_21 {dimension_numbers = #tpu.dot_dimension_numbers<[1], [0], [0], [1], [0, 0, 1, 1], [], []>} : vector<64x32xbf16>, vector<32x32xbf16>, vector<64x32xf32> -> vector<64x32xf32>
    %38 = arith.addf %8, %37 : vector<64x32xf32>
    %c0_22 = arith.constant 0 : index
    %c0_23 = arith.constant 0 : index
    %c0_24 = arith.constant 0 : index
    %39 = vector.load %arg7[%c0_22, %c0_23, %c0_24] : memref<3x1x32xf32, #tpu.memory_space<vmem>>, vector<1x1x32xf32>
    %40 = vector.shape_cast %39 : vector<1x1x32xf32> to vector<1x32xf32>
    %41 = vector.broadcast %40 : vector<1x32xf32> to vector<64x32xf32>
    %42 = arith.addf %38, %41 : vector<64x32xf32>
    %c2_i32 = arith.constant 2 : i32
    %43 = vector.broadcast %c2_i32 : i32 to vector<64x1xi32>
    %44 = arith.cmpi sge, %2, %43 : vector<64x1xi32>
    %c2_i32_25 = arith.constant 2 : i32
    %45 = tpu.dynamic_rotate %42 by %c2_i32_25 dim 0 : vector<64x32xf32>, i32 -> vector<64x32xf32>
    %cst_26 = arith.constant 0.000000e+00 : f32
    %46 = vector.shape_cast %44 : vector<64x1xi1> to vector<64x1xi1>
    %47 = vector.broadcast %46 : vector<64x1xi1> to vector<64x32xi1>
    %48 = vector.broadcast %cst_26 : f32 to vector<64x32xf32>
    %49 = arith.select %47, %45, %48 : vector<64x32xi1>, vector<64x32xf32>
    %c62_i32 = arith.constant 62 : i32
    %50 = vector.broadcast %c62_i32 : i32 to vector<64x1xi32>
    %51 = arith.cmpi slt, %2, %50 : vector<64x1xi32>
    %c62_i32_27 = arith.constant 62 : i32
    %52 = tpu.dynamic_rotate %42 by %c62_i32_27 dim 0 : vector<64x32xf32>, i32 -> vector<64x32xf32>
    %cst_28 = arith.constant 0.000000e+00 : f32
    %53 = vector.shape_cast %51 : vector<64x1xi1> to vector<64x1xi1>
    %54 = vector.broadcast %53 : vector<64x1xi1> to vector<64x32xi1>
    %55 = vector.broadcast %cst_28 : f32 to vector<64x32xf32>
    %56 = arith.select %54, %52, %55 : vector<64x32xi1>, vector<64x32xf32>
    %57 = tpu.concatenate %49, %42, %56 in 1 : vector<64x32xf32>, vector<64x32xf32>, vector<64x32xf32> -> vector<64x96xf32>
    %c1 = arith.constant 1 : index
    %c0_29 = arith.constant 0 : index
    %c0_30 = arith.constant 0 : index
    %58 = vector.load %arg4[%c1, %c0_29, %c0_30] : memref<3x96x32xbf16, #tpu.memory_space<vmem>>, vector<1x96x32xbf16>
    %59 = vector.shape_cast %58 : vector<1x96x32xbf16> to vector<96x32xbf16>
    %60 = arith.truncf %57 : vector<64x96xf32> to vector<64x96xbf16>
    %cst_31 = arith.constant dense<0.000000e+00> : vector<64x32xf32>
    %61 = tpu.matmul %60, %59, %cst_31 {dimension_numbers = #tpu.dot_dimension_numbers<[1], [0], [0], [1], [0, 0, 1, 1], [], []>} : vector<64x96xbf16>, vector<96x32xbf16>, vector<64x32xf32> -> vector<64x32xf32>
    %c1_32 = arith.constant 1 : index
    %c0_33 = arith.constant 0 : index
    %c0_34 = arith.constant 0 : index
    %62 = vector.load %arg5[%c1_32, %c0_33, %c0_34] : memref<3x1x32xf32, #tpu.memory_space<vmem>>, vector<1x1x32xf32>
    %63 = vector.shape_cast %62 : vector<1x1x32xf32> to vector<1x32xf32>
    %64 = vector.broadcast %63 : vector<1x32xf32> to vector<64x32xf32>
    %65 = arith.addf %61, %64 : vector<64x32xf32>
    %cst_35 = arith.constant 0.000000e+00 : f32
    %66 = vector.broadcast %cst_35 : f32 to vector<64x32xf32>
    %67 = arith.maximumf %65, %66 : vector<64x32xf32>
    %c1_36 = arith.constant 1 : index
    %c0_37 = arith.constant 0 : index
    %c0_38 = arith.constant 0 : index
    %68 = vector.load %arg6[%c1_36, %c0_37, %c0_38] : memref<3x32x32xbf16, #tpu.memory_space<vmem>>, vector<1x32x32xbf16>
    %69 = vector.shape_cast %68 : vector<1x32x32xbf16> to vector<32x32xbf16>
    %70 = arith.truncf %67 : vector<64x32xf32> to vector<64x32xbf16>
    %cst_39 = arith.constant dense<0.000000e+00> : vector<64x32xf32>
    %71 = tpu.matmul %70, %69, %cst_39 {dimension_numbers = #tpu.dot_dimension_numbers<[1], [0], [0], [1], [0, 0, 1, 1], [], []>} : vector<64x32xbf16>, vector<32x32xbf16>, vector<64x32xf32> -> vector<64x32xf32>
    %72 = arith.addf %42, %71 : vector<64x32xf32>
    %c1_40 = arith.constant 1 : index
    %c0_41 = arith.constant 0 : index
    %c0_42 = arith.constant 0 : index
    %73 = vector.load %arg7[%c1_40, %c0_41, %c0_42] : memref<3x1x32xf32, #tpu.memory_space<vmem>>, vector<1x1x32xf32>
    %74 = vector.shape_cast %73 : vector<1x1x32xf32> to vector<1x32xf32>
    %75 = vector.broadcast %74 : vector<1x32xf32> to vector<64x32xf32>
    %76 = arith.addf %72, %75 : vector<64x32xf32>
    %c4_i32 = arith.constant 4 : i32
    %77 = vector.broadcast %c4_i32 : i32 to vector<64x1xi32>
    %78 = arith.cmpi sge, %2, %77 : vector<64x1xi32>
    %c4_i32_43 = arith.constant 4 : i32
    %79 = tpu.dynamic_rotate %76 by %c4_i32_43 dim 0 : vector<64x32xf32>, i32 -> vector<64x32xf32>
    %cst_44 = arith.constant 0.000000e+00 : f32
    %80 = vector.shape_cast %78 : vector<64x1xi1> to vector<64x1xi1>
    %81 = vector.broadcast %80 : vector<64x1xi1> to vector<64x32xi1>
    %82 = vector.broadcast %cst_44 : f32 to vector<64x32xf32>
    %83 = arith.select %81, %79, %82 : vector<64x32xi1>, vector<64x32xf32>
    %c60_i32 = arith.constant 60 : i32
    %84 = vector.broadcast %c60_i32 : i32 to vector<64x1xi32>
    %85 = arith.cmpi slt, %2, %84 : vector<64x1xi32>
    %c60_i32_45 = arith.constant 60 : i32
    %86 = tpu.dynamic_rotate %76 by %c60_i32_45 dim 0 : vector<64x32xf32>, i32 -> vector<64x32xf32>
    %cst_46 = arith.constant 0.000000e+00 : f32
    %87 = vector.shape_cast %85 : vector<64x1xi1> to vector<64x1xi1>
    %88 = vector.broadcast %87 : vector<64x1xi1> to vector<64x32xi1>
    %89 = vector.broadcast %cst_46 : f32 to vector<64x32xf32>
    %90 = arith.select %88, %86, %89 : vector<64x32xi1>, vector<64x32xf32>
    %91 = tpu.concatenate %83, %76, %90 in 1 : vector<64x32xf32>, vector<64x32xf32>, vector<64x32xf32> -> vector<64x96xf32>
    %c2 = arith.constant 2 : index
    %c0_47 = arith.constant 0 : index
    %c0_48 = arith.constant 0 : index
    %92 = vector.load %arg4[%c2, %c0_47, %c0_48] : memref<3x96x32xbf16, #tpu.memory_space<vmem>>, vector<1x96x32xbf16>
    %93 = vector.shape_cast %92 : vector<1x96x32xbf16> to vector<96x32xbf16>
    %94 = arith.truncf %91 : vector<64x96xf32> to vector<64x96xbf16>
    %cst_49 = arith.constant dense<0.000000e+00> : vector<64x32xf32>
    %95 = tpu.matmul %94, %93, %cst_49 {dimension_numbers = #tpu.dot_dimension_numbers<[1], [0], [0], [1], [0, 0, 1, 1], [], []>} : vector<64x96xbf16>, vector<96x32xbf16>, vector<64x32xf32> -> vector<64x32xf32>
    %c2_50 = arith.constant 2 : index
    %c0_51 = arith.constant 0 : index
    %c0_52 = arith.constant 0 : index
    %96 = vector.load %arg5[%c2_50, %c0_51, %c0_52] : memref<3x1x32xf32, #tpu.memory_space<vmem>>, vector<1x1x32xf32>
    %97 = vector.shape_cast %96 : vector<1x1x32xf32> to vector<1x32xf32>
    %98 = vector.broadcast %97 : vector<1x32xf32> to vector<64x32xf32>
    %99 = arith.addf %95, %98 : vector<64x32xf32>
    %cst_53 = arith.constant 0.000000e+00 : f32
    %100 = vector.broadcast %cst_53 : f32 to vector<64x32xf32>
    %101 = arith.maximumf %99, %100 : vector<64x32xf32>
    %c2_54 = arith.constant 2 : index
    %c0_55 = arith.constant 0 : index
    %c0_56 = arith.constant 0 : index
    %102 = vector.load %arg6[%c2_54, %c0_55, %c0_56] : memref<3x32x32xbf16, #tpu.memory_space<vmem>>, vector<1x32x32xbf16>
    %103 = vector.shape_cast %102 : vector<1x32x32xbf16> to vector<32x32xbf16>
    %104 = arith.truncf %101 : vector<64x32xf32> to vector<64x32xbf16>
    %cst_57 = arith.constant dense<0.000000e+00> : vector<64x32xf32>
    %105 = tpu.matmul %104, %103, %cst_57 {dimension_numbers = #tpu.dot_dimension_numbers<[1], [0], [0], [1], [0, 0, 1, 1], [], []>} : vector<64x32xbf16>, vector<32x32xbf16>, vector<64x32xf32> -> vector<64x32xf32>
    %106 = arith.addf %76, %105 : vector<64x32xf32>
    %c2_58 = arith.constant 2 : index
    %c0_59 = arith.constant 0 : index
    %c0_60 = arith.constant 0 : index
    %107 = vector.load %arg7[%c2_58, %c0_59, %c0_60] : memref<3x1x32xf32, #tpu.memory_space<vmem>>, vector<1x1x32xf32>
    %108 = vector.shape_cast %107 : vector<1x1x32xf32> to vector<1x32xf32>
    %109 = vector.broadcast %108 : vector<1x32xf32> to vector<64x32xf32>
    %110 = arith.addf %106, %109 : vector<64x32xf32>
    %c0_61 = arith.constant 0 : index
    %c0_62 = arith.constant 0 : index
    %111 = vector.load %arg8[%c0_61, %c0_62] : memref<32x8xbf16, #tpu.memory_space<vmem>>, vector<32x8xbf16>
    %112 = arith.truncf %110 : vector<64x32xf32> to vector<64x32xbf16>
    %cst_63 = arith.constant dense<0.000000e+00> : vector<64x8xf32>
    %113 = tpu.matmul %112, %111, %cst_63 {dimension_numbers = #tpu.dot_dimension_numbers<[1], [0], [0], [1], [0, 0, 1, 1], [], []>} : vector<64x32xbf16>, vector<32x8xbf16>, vector<64x8xf32> -> vector<64x8xf32>
    %c0_64 = arith.constant 0 : index
    %c0_65 = arith.constant 0 : index
    %114 = vector.load %arg9[%c0_64, %c0_65] : memref<1x8xf32, #tpu.memory_space<vmem>>, vector<1x8xf32>
    %115 = vector.broadcast %114 : vector<1x8xf32> to vector<64x8xf32>
    %116 = arith.addf %113, %115 : vector<64x8xf32>
    %cst_66 = arith.constant dense<0xFF800000> : vector<64xf32>
    %117 = vector.multi_reduction <maximumf>, %116, %cst_66 [1] : vector<64x8xf32> to vector<64xf32>
    %118 = vector.shape_cast %117 : vector<64xf32> to vector<64x1xf32>
    %119 = vector.broadcast %118 : vector<64x1xf32> to vector<64x8xf32>
    %120 = arith.subf %116, %119 : vector<64x8xf32>
    %121 = math.exp %120 : vector<64x8xf32>
    %cst_67 = arith.constant dense<0.000000e+00> : vector<64xf32>
    %122 = vector.multi_reduction <add>, %121, %cst_67 [1] : vector<64x8xf32> to vector<64xf32>
    %123 = vector.shape_cast %122 : vector<64xf32> to vector<64x1xf32>
    %124 = tpu.reciprocal %123 {approx = true} : vector<64x1xf32> -> vector<64x1xf32>
    %125 = vector.broadcast %124 : vector<64x1xf32> to vector<64x8xf32>
    %126 = arith.mulf %121, %125 : vector<64x8xf32>
    %c0_68 = arith.constant 0 : index
    %c0_69 = arith.constant 0 : index
    %127 = vector.load %arg10[%c0_68, %c0_69] : memref<8x32xbf16, #tpu.memory_space<vmem>>, vector<8x32xbf16>
    %128 = arith.truncf %126 : vector<64x8xf32> to vector<64x8xbf16>
    %cst_70 = arith.constant dense<0.000000e+00> : vector<64x32xf32>
    %129 = tpu.matmul %128, %127, %cst_70 {dimension_numbers = #tpu.dot_dimension_numbers<[1], [0], [0], [1], [0, 0, 1, 1], [], []>} : vector<64x8xbf16>, vector<8x32xbf16>, vector<64x32xf32> -> vector<64x32xf32>
    %c0_71 = arith.constant 0 : index
    %c0_72 = arith.constant 0 : index
    %130 = vector.load %arg11[%c0_71, %c0_72] : memref<1x32xf32, #tpu.memory_space<vmem>>, vector<1x32xf32>
    %131 = vector.broadcast %130 : vector<1x32xf32> to vector<64x32xf32>
    %132 = arith.addf %129, %131 : vector<64x32xf32>
    %c1_i32_73 = arith.constant 1 : i32
    %133 = vector.broadcast %c1_i32_73 : i32 to vector<64x1xi32>
    %134 = arith.cmpi sge, %2, %133 : vector<64x1xi32>
    %c1_i32_74 = arith.constant 1 : i32
    %135 = tpu.dynamic_rotate %132 by %c1_i32_74 dim 0 : vector<64x32xf32>, i32 -> vector<64x32xf32>
    %cst_75 = arith.constant 0.000000e+00 : f32
    %136 = vector.shape_cast %134 : vector<64x1xi1> to vector<64x1xi1>
    %137 = vector.broadcast %136 : vector<64x1xi1> to vector<64x32xi1>
    %138 = vector.broadcast %cst_75 : f32 to vector<64x32xf32>
    %139 = arith.select %137, %135, %138 : vector<64x32xi1>, vector<64x32xf32>
    %c63_i32_76 = arith.constant 63 : i32
    %140 = vector.broadcast %c63_i32_76 : i32 to vector<64x1xi32>
    %141 = arith.cmpi slt, %2, %140 : vector<64x1xi32>
    %c63_i32_77 = arith.constant 63 : i32
    %142 = tpu.dynamic_rotate %132 by %c63_i32_77 dim 0 : vector<64x32xf32>, i32 -> vector<64x32xf32>
    %cst_78 = arith.constant 0.000000e+00 : f32
    %143 = vector.shape_cast %141 : vector<64x1xi1> to vector<64x1xi1>
    %144 = vector.broadcast %143 : vector<64x1xi1> to vector<64x32xi1>
    %145 = vector.broadcast %cst_78 : f32 to vector<64x32xf32>
    %146 = arith.select %144, %142, %145 : vector<64x32xi1>, vector<64x32xf32>
    %147 = tpu.concatenate %139, %132, %146 in 1 : vector<64x32xf32>, vector<64x32xf32>, vector<64x32xf32> -> vector<64x96xf32>
    %c0_79 = arith.constant 0 : index
    %c0_80 = arith.constant 0 : index
    %c0_81 = arith.constant 0 : index
    %148 = vector.load %arg12[%c0_79, %c0_80, %c0_81] : memref<3x96x32xbf16, #tpu.memory_space<vmem>>, vector<1x96x32xbf16>
    %149 = vector.shape_cast %148 : vector<1x96x32xbf16> to vector<96x32xbf16>
    %150 = arith.truncf %147 : vector<64x96xf32> to vector<64x96xbf16>
    %cst_82 = arith.constant dense<0.000000e+00> : vector<64x32xf32>
    %151 = tpu.matmul %150, %149, %cst_82 {dimension_numbers = #tpu.dot_dimension_numbers<[1], [0], [0], [1], [0, 0, 1, 1], [], []>} : vector<64x96xbf16>, vector<96x32xbf16>, vector<64x32xf32> -> vector<64x32xf32>
    %c0_83 = arith.constant 0 : index
    %c0_84 = arith.constant 0 : index
    %c0_85 = arith.constant 0 : index
    %152 = vector.load %arg13[%c0_83, %c0_84, %c0_85] : memref<3x1x32xf32, #tpu.memory_space<vmem>>, vector<1x1x32xf32>
    %153 = vector.shape_cast %152 : vector<1x1x32xf32> to vector<1x32xf32>
    %154 = vector.broadcast %153 : vector<1x32xf32> to vector<64x32xf32>
    %155 = arith.addf %151, %154 : vector<64x32xf32>
    %cst_86 = arith.constant 0.000000e+00 : f32
    %156 = vector.broadcast %cst_86 : f32 to vector<64x32xf32>
    %157 = arith.maximumf %155, %156 : vector<64x32xf32>
    %c0_87 = arith.constant 0 : index
    %c0_88 = arith.constant 0 : index
    %c0_89 = arith.constant 0 : index
    %158 = vector.load %arg14[%c0_87, %c0_88, %c0_89] : memref<3x32x32xbf16, #tpu.memory_space<vmem>>, vector<1x32x32xbf16>
    %159 = vector.shape_cast %158 : vector<1x32x32xbf16> to vector<32x32xbf16>
    %160 = arith.truncf %157 : vector<64x32xf32> to vector<64x32xbf16>
    %cst_90 = arith.constant dense<0.000000e+00> : vector<64x32xf32>
    %161 = tpu.matmul %160, %159, %cst_90 {dimension_numbers = #tpu.dot_dimension_numbers<[1], [0], [0], [1], [0, 0, 1, 1], [], []>} : vector<64x32xbf16>, vector<32x32xbf16>, vector<64x32xf32> -> vector<64x32xf32>
    %162 = arith.addf %132, %161 : vector<64x32xf32>
    %c0_91 = arith.constant 0 : index
    %c0_92 = arith.constant 0 : index
    %c0_93 = arith.constant 0 : index
    %163 = vector.load %arg15[%c0_91, %c0_92, %c0_93] : memref<3x1x32xf32, #tpu.memory_space<vmem>>, vector<1x1x32xf32>
    %164 = vector.shape_cast %163 : vector<1x1x32xf32> to vector<1x32xf32>
    %165 = vector.broadcast %164 : vector<1x32xf32> to vector<64x32xf32>
    %166 = arith.addf %162, %165 : vector<64x32xf32>
    %c2_i32_94 = arith.constant 2 : i32
    %167 = vector.broadcast %c2_i32_94 : i32 to vector<64x1xi32>
    %168 = arith.cmpi sge, %2, %167 : vector<64x1xi32>
    %c2_i32_95 = arith.constant 2 : i32
    %169 = tpu.dynamic_rotate %166 by %c2_i32_95 dim 0 : vector<64x32xf32>, i32 -> vector<64x32xf32>
    %cst_96 = arith.constant 0.000000e+00 : f32
    %170 = vector.shape_cast %168 : vector<64x1xi1> to vector<64x1xi1>
    %171 = vector.broadcast %170 : vector<64x1xi1> to vector<64x32xi1>
    %172 = vector.broadcast %cst_96 : f32 to vector<64x32xf32>
    %173 = arith.select %171, %169, %172 : vector<64x32xi1>, vector<64x32xf32>
    %c62_i32_97 = arith.constant 62 : i32
    %174 = vector.broadcast %c62_i32_97 : i32 to vector<64x1xi32>
    %175 = arith.cmpi slt, %2, %174 : vector<64x1xi32>
    %c62_i32_98 = arith.constant 62 : i32
    %176 = tpu.dynamic_rotate %166 by %c62_i32_98 dim 0 : vector<64x32xf32>, i32 -> vector<64x32xf32>
    %cst_99 = arith.constant 0.000000e+00 : f32
    %177 = vector.shape_cast %175 : vector<64x1xi1> to vector<64x1xi1>
    %178 = vector.broadcast %177 : vector<64x1xi1> to vector<64x32xi1>
    %179 = vector.broadcast %cst_99 : f32 to vector<64x32xf32>
    %180 = arith.select %178, %176, %179 : vector<64x32xi1>, vector<64x32xf32>
    %181 = tpu.concatenate %173, %166, %180 in 1 : vector<64x32xf32>, vector<64x32xf32>, vector<64x32xf32> -> vector<64x96xf32>
    %c1_100 = arith.constant 1 : index
    %c0_101 = arith.constant 0 : index
    %c0_102 = arith.constant 0 : index
    %182 = vector.load %arg12[%c1_100, %c0_101, %c0_102] : memref<3x96x32xbf16, #tpu.memory_space<vmem>>, vector<1x96x32xbf16>
    %183 = vector.shape_cast %182 : vector<1x96x32xbf16> to vector<96x32xbf16>
    %184 = arith.truncf %181 : vector<64x96xf32> to vector<64x96xbf16>
    %cst_103 = arith.constant dense<0.000000e+00> : vector<64x32xf32>
    %185 = tpu.matmul %184, %183, %cst_103 {dimension_numbers = #tpu.dot_dimension_numbers<[1], [0], [0], [1], [0, 0, 1, 1], [], []>} : vector<64x96xbf16>, vector<96x32xbf16>, vector<64x32xf32> -> vector<64x32xf32>
    %c1_104 = arith.constant 1 : index
    %c0_105 = arith.constant 0 : index
    %c0_106 = arith.constant 0 : index
    %186 = vector.load %arg13[%c1_104, %c0_105, %c0_106] : memref<3x1x32xf32, #tpu.memory_space<vmem>>, vector<1x1x32xf32>
    %187 = vector.shape_cast %186 : vector<1x1x32xf32> to vector<1x32xf32>
    %188 = vector.broadcast %187 : vector<1x32xf32> to vector<64x32xf32>
    %189 = arith.addf %185, %188 : vector<64x32xf32>
    %cst_107 = arith.constant 0.000000e+00 : f32
    %190 = vector.broadcast %cst_107 : f32 to vector<64x32xf32>
    %191 = arith.maximumf %189, %190 : vector<64x32xf32>
    %c1_108 = arith.constant 1 : index
    %c0_109 = arith.constant 0 : index
    %c0_110 = arith.constant 0 : index
    %192 = vector.load %arg14[%c1_108, %c0_109, %c0_110] : memref<3x32x32xbf16, #tpu.memory_space<vmem>>, vector<1x32x32xbf16>
    %193 = vector.shape_cast %192 : vector<1x32x32xbf16> to vector<32x32xbf16>
    %194 = arith.truncf %191 : vector<64x32xf32> to vector<64x32xbf16>
    %cst_111 = arith.constant dense<0.000000e+00> : vector<64x32xf32>
    %195 = tpu.matmul %194, %193, %cst_111 {dimension_numbers = #tpu.dot_dimension_numbers<[1], [0], [0], [1], [0, 0, 1, 1], [], []>} : vector<64x32xbf16>, vector<32x32xbf16>, vector<64x32xf32> -> vector<64x32xf32>
    %196 = arith.addf %166, %195 : vector<64x32xf32>
    %c1_112 = arith.constant 1 : index
    %c0_113 = arith.constant 0 : index
    %c0_114 = arith.constant 0 : index
    %197 = vector.load %arg15[%c1_112, %c0_113, %c0_114] : memref<3x1x32xf32, #tpu.memory_space<vmem>>, vector<1x1x32xf32>
    %198 = vector.shape_cast %197 : vector<1x1x32xf32> to vector<1x32xf32>
    %199 = vector.broadcast %198 : vector<1x32xf32> to vector<64x32xf32>
    %200 = arith.addf %196, %199 : vector<64x32xf32>
    %c4_i32_115 = arith.constant 4 : i32
    %201 = vector.broadcast %c4_i32_115 : i32 to vector<64x1xi32>
    %202 = arith.cmpi sge, %2, %201 : vector<64x1xi32>
    %c4_i32_116 = arith.constant 4 : i32
    %203 = tpu.dynamic_rotate %200 by %c4_i32_116 dim 0 : vector<64x32xf32>, i32 -> vector<64x32xf32>
    %cst_117 = arith.constant 0.000000e+00 : f32
    %204 = vector.shape_cast %202 : vector<64x1xi1> to vector<64x1xi1>
    %205 = vector.broadcast %204 : vector<64x1xi1> to vector<64x32xi1>
    %206 = vector.broadcast %cst_117 : f32 to vector<64x32xf32>
    %207 = arith.select %205, %203, %206 : vector<64x32xi1>, vector<64x32xf32>
    %c60_i32_118 = arith.constant 60 : i32
    %208 = vector.broadcast %c60_i32_118 : i32 to vector<64x1xi32>
    %209 = arith.cmpi slt, %2, %208 : vector<64x1xi32>
    %c60_i32_119 = arith.constant 60 : i32
    %210 = tpu.dynamic_rotate %200 by %c60_i32_119 dim 0 : vector<64x32xf32>, i32 -> vector<64x32xf32>
    %cst_120 = arith.constant 0.000000e+00 : f32
    %211 = vector.shape_cast %209 : vector<64x1xi1> to vector<64x1xi1>
    %212 = vector.broadcast %211 : vector<64x1xi1> to vector<64x32xi1>
    %213 = vector.broadcast %cst_120 : f32 to vector<64x32xf32>
    %214 = arith.select %212, %210, %213 : vector<64x32xi1>, vector<64x32xf32>
    %215 = tpu.concatenate %207, %200, %214 in 1 : vector<64x32xf32>, vector<64x32xf32>, vector<64x32xf32> -> vector<64x96xf32>
    %c2_121 = arith.constant 2 : index
    %c0_122 = arith.constant 0 : index
    %c0_123 = arith.constant 0 : index
    %216 = vector.load %arg12[%c2_121, %c0_122, %c0_123] : memref<3x96x32xbf16, #tpu.memory_space<vmem>>, vector<1x96x32xbf16>
    %217 = vector.shape_cast %216 : vector<1x96x32xbf16> to vector<96x32xbf16>
    %218 = arith.truncf %215 : vector<64x96xf32> to vector<64x96xbf16>
    %cst_124 = arith.constant dense<0.000000e+00> : vector<64x32xf32>
    %219 = tpu.matmul %218, %217, %cst_124 {dimension_numbers = #tpu.dot_dimension_numbers<[1], [0], [0], [1], [0, 0, 1, 1], [], []>} : vector<64x96xbf16>, vector<96x32xbf16>, vector<64x32xf32> -> vector<64x32xf32>
    %c2_125 = arith.constant 2 : index
    %c0_126 = arith.constant 0 : index
    %c0_127 = arith.constant 0 : index
    %220 = vector.load %arg13[%c2_125, %c0_126, %c0_127] : memref<3x1x32xf32, #tpu.memory_space<vmem>>, vector<1x1x32xf32>
    %221 = vector.shape_cast %220 : vector<1x1x32xf32> to vector<1x32xf32>
    %222 = vector.broadcast %221 : vector<1x32xf32> to vector<64x32xf32>
    %223 = arith.addf %219, %222 : vector<64x32xf32>
    %cst_128 = arith.constant 0.000000e+00 : f32
    %224 = vector.broadcast %cst_128 : f32 to vector<64x32xf32>
    %225 = arith.maximumf %223, %224 : vector<64x32xf32>
    %c2_129 = arith.constant 2 : index
    %c0_130 = arith.constant 0 : index
    %c0_131 = arith.constant 0 : index
    %226 = vector.load %arg14[%c2_129, %c0_130, %c0_131] : memref<3x32x32xbf16, #tpu.memory_space<vmem>>, vector<1x32x32xbf16>
    %227 = vector.shape_cast %226 : vector<1x32x32xbf16> to vector<32x32xbf16>
    %228 = arith.truncf %225 : vector<64x32xf32> to vector<64x32xbf16>
    %cst_132 = arith.constant dense<0.000000e+00> : vector<64x32xf32>
    %229 = tpu.matmul %228, %227, %cst_132 {dimension_numbers = #tpu.dot_dimension_numbers<[1], [0], [0], [1], [0, 0, 1, 1], [], []>} : vector<64x32xbf16>, vector<32x32xbf16>, vector<64x32xf32> -> vector<64x32xf32>
    %230 = arith.addf %200, %229 : vector<64x32xf32>
    %c2_133 = arith.constant 2 : index
    %c0_134 = arith.constant 0 : index
    %c0_135 = arith.constant 0 : index
    %231 = vector.load %arg15[%c2_133, %c0_134, %c0_135] : memref<3x1x32xf32, #tpu.memory_space<vmem>>, vector<1x1x32xf32>
    %232 = vector.shape_cast %231 : vector<1x1x32xf32> to vector<1x32xf32>
    %233 = vector.broadcast %232 : vector<1x32xf32> to vector<64x32xf32>
    %234 = arith.addf %230, %233 : vector<64x32xf32>
    %c0_136 = arith.constant 0 : index
    %c0_137 = arith.constant 0 : index
    %235 = vector.load %arg16[%c0_136, %c0_137] : memref<32x8xbf16, #tpu.memory_space<vmem>>, vector<32x8xbf16>
    %236 = arith.truncf %234 : vector<64x32xf32> to vector<64x32xbf16>
    %cst_138 = arith.constant dense<0.000000e+00> : vector<64x8xf32>
    %237 = tpu.matmul %236, %235, %cst_138 {dimension_numbers = #tpu.dot_dimension_numbers<[1], [0], [0], [1], [0, 0, 1, 1], [], []>} : vector<64x32xbf16>, vector<32x8xbf16>, vector<64x8xf32> -> vector<64x8xf32>
    %c0_139 = arith.constant 0 : index
    %c0_140 = arith.constant 0 : index
    %238 = vector.load %arg17[%c0_139, %c0_140] : memref<1x8xf32, #tpu.memory_space<vmem>>, vector<1x8xf32>
    %239 = vector.broadcast %238 : vector<1x8xf32> to vector<64x8xf32>
    %240 = arith.addf %237, %239 : vector<64x8xf32>
    %c0_141 = arith.constant 0 : index
    %c0_142 = arith.constant 0 : index
    %c0_143 = arith.constant 0 : index
    %241 = vector.load %arg18[%c0_141, %c0_142, %c0_143] : memref<1x64x8xf32, #tpu.memory_space<vmem>>, vector<1x64x8xf32>
    %242 = vector.shape_cast %241 : vector<1x64x8xf32> to vector<64x8xf32>
    %243 = vector.shape_cast %240 : vector<64x8xf32> to vector<1x64x8xf32>
    tpu.vector_store %arg18[%c0_141, %c0_142, %c0_143], %243 {strides = array<i32>} : memref<1x64x8xf32, #tpu.memory_space<vmem>>, vector<1x64x8xf32>,
    return
  }
  func.func @transform_0(%arg0: i32) -> (i32, i32, i32) {
    %c0_i32 = arith.constant 0 : i32
    %c0_i32_0 = arith.constant 0 : i32
    %c0_i32_1 = arith.constant 0 : i32
    return %arg0, %c0_i32, %c0_i32_0 : i32, i32, i32
  }
  func.func @transform_1(%arg0: i32) -> (i32, i32) {
    %c0_i32 = arith.constant 0 : i32
    %c0_i32_0 = arith.constant 0 : i32
    %c0_i32_1 = arith.constant 0 : i32
    return %c0_i32, %c0_i32_0 : i32, i32
  }
  func.func @transform_2(%arg0: i32) -> (i32, i32) {
    %c0_i32 = arith.constant 0 : i32
    %c0_i32_0 = arith.constant 0 : i32
    %c0_i32_1 = arith.constant 0 : i32
    return %c0_i32, %c0_i32_0 : i32, i32
  }
  func.func @transform_3(%arg0: i32) -> (i32, i32, i32) {
    %c0_i32 = arith.constant 0 : i32
    %c0_i32_0 = arith.constant 0 : i32
    %c0_i32_1 = arith.constant 0 : i32
    %c0_i32_2 = arith.constant 0 : i32
    return %c0_i32, %c0_i32_0, %c0_i32_1 : i32, i32, i32
  }
  func.func @transform_4(%arg0: i32) -> (i32, i32, i32) {
    %c0_i32 = arith.constant 0 : i32
    %c0_i32_0 = arith.constant 0 : i32
    %c0_i32_1 = arith.constant 0 : i32
    %c0_i32_2 = arith.constant 0 : i32
    return %c0_i32, %c0_i32_0, %c0_i32_1 : i32, i32, i32
  }
  func.func @transform_5(%arg0: i32) -> (i32, i32, i32) {
    %c0_i32 = arith.constant 0 : i32
    %c0_i32_0 = arith.constant 0 : i32
    %c0_i32_1 = arith.constant 0 : i32
    %c0_i32_2 = arith.constant 0 : i32
    return %c0_i32, %c0_i32_0, %c0_i32_1 : i32, i32, i32
  }
  func.func @transform_6(%arg0: i32) -> (i32, i32, i32) {
    %c0_i32 = arith.constant 0 : i32
    %c0_i32_0 = arith.constant 0 : i32
    %c0_i32_1 = arith.constant 0 : i32
    %c0_i32_2 = arith.constant 0 : i32
    return %c0_i32, %c0_i32_0, %c0_i32_1 : i32, i32, i32
  }
  func.func @transform_7(%arg0: i32) -> (i32, i32) {
    %c0_i32 = arith.constant 0 : i32
    %c0_i32_0 = arith.constant 0 : i32
    %c0_i32_1 = arith.constant 0 : i32
    return %c0_i32, %c0_i32_0 : i32, i32
  }
  func.func @transform_8(%arg0: i32) -> (i32, i32) {
    %c0_i32 = arith.constant 0 : i32
    %c0_i32_0 = arith.constant 0 : i32
    %c0_i32_1 = arith.constant 0 : i32
    return %c0_i32, %c0_i32_0 : i32, i32
  }
  func.func @transform_9(%arg0: i32) -> (i32, i32) {
    %c0_i32 = arith.constant 0 : i32
    %c0_i32_0 = arith.constant 0 : i32
    %c0_i32_1 = arith.constant 0 : i32
    return %c0_i32, %c0_i32_0 : i32, i32
  }
  func.func @transform_10(%arg0: i32) -> (i32, i32) {
    %c0_i32 = arith.constant 0 : i32
    %c0_i32_0 = arith.constant 0 : i32
    %c0_i32_1 = arith.constant 0 : i32
    return %c0_i32, %c0_i32_0 : i32, i32
  }
  func.func @transform_11(%arg0: i32) -> (i32, i32, i32) {
    %c0_i32 = arith.constant 0 : i32
    %c0_i32_0 = arith.constant 0 : i32
    %c0_i32_1 = arith.constant 0 : i32
    %c0_i32_2 = arith.constant 0 : i32
    return %c0_i32, %c0_i32_0, %c0_i32_1 : i32, i32, i32
  }
  func.func @transform_12(%arg0: i32) -> (i32, i32, i32) {
    %c0_i32 = arith.constant 0 : i32
    %c0_i32_0 = arith.constant 0 : i32
    %c0_i32_1 = arith.constant 0 : i32
    %c0_i32_2 = arith.constant 0 : i32
    return %c0_i32, %c0_i32_0, %c0_i32_1 : i32, i32, i32
  }
  func.func @transform_13(%arg0: i32) -> (i32, i32, i32) {
    %c0_i32 = arith.constant 0 : i32
    %c0_i32_0 = arith.constant 0 : i32
    %c0_i32_1 = arith.constant 0 : i32
    %c0_i32_2 = arith.constant 0 : i32
    return %c0_i32, %c0_i32_0, %c0_i32_1 : i32, i32, i32
  }
  func.func @transform_14(%arg0: i32) -> (i32, i32, i32) {
    %c0_i32 = arith.constant 0 : i32
    %c0_i32_0 = arith.constant 0 : i32
    %c0_i32_1 = arith.constant 0 : i32
    %c0_i32_2 = arith.constant 0 : i32
    return %c0_i32, %c0_i32_0, %c0_i32_1 : i32, i32, i32
  }
  func.func @transform_15(%arg0: i32) -> (i32, i32) {
    %c0_i32 = arith.constant 0 : i32
    %c0_i32_0 = arith.constant 0 : i32
    %c0_i32_1 = arith.constant 0 : i32
    return %c0_i32, %c0_i32_0 : i32, i32
  }
  func.func @transform_16(%arg0: i32) -> (i32, i32) {
    %c0_i32 = arith.constant 0 : i32
    %c0_i32_0 = arith.constant 0 : i32
    %c0_i32_1 = arith.constant 0 : i32
    return %c0_i32, %c0_i32_0 : i32, i32
  }
  func.func @transform_17(%arg0: i32) -> (i32, i32, i32) {
    %c0_i32 = arith.constant 0 : i32
    %c0_i32_0 = arith.constant 0 : i32
    %c0_i32_1 = arith.constant 0 : i32
    return %arg0, %c0_i32, %c0_i32_0 : i32, i32, i32
  }
}

</mosaic_0001>

<bundles_post_ra>
// kernel: multi_stage_tcn_forward.1
= control target key start
LH: loop header
LB: loop body
LE: loop exit
PB: predicated region body
PF: predicated region fallthrough
CT: control target
= control target key end

     0   :  { %s4611_s24 = smov 0   ;;  %s5557_s0 = inlined_call_operand.vmem [shape: f32[2,64,8], index: 0, kind: input, shape index: {}]   ;;  %s5558_s1 = inlined_call_operand.vmem [shape: bf16[8,32], index: 1, kind: input, shape index: {}]   ;;  %s5559_s2 = inlined_call_operand.vmem [shape: f32[1,32], index: 2, kind: input, shape index: {}]   ;;  %s5560_s3 = inlined_call_operand.vmem [shape: bf16[3,96,32], index: 3, kind: input, shape index: {}]   ;;  %s5561_s4 = inlined_call_operand.vmem [shape: f32[3,1,32], index: 4, kind: input, shape index: {}]   ;;  %s5562_s5 = inlined_call_operand.vmem [shape: bf16[3,32,32], index: 5, kind: input, shape index: {}]   ;;  %s5563_s6 = inlined_call_operand.vmem [shape: f32[3,1,32], index: 6, kind: input, shape index: {}]   ;;  %s5564_s7 = inlined_call_operand.vmem [shape: bf16[32,8], index: 7, kind: input, shape index: {}]   ;;  %s5565_s8 = inlined_call_operand.vmem [shape: f32[1,8], index: 8, kind: input, shape index: {}]   ;;  %s5566_s9 = inlined_call_operand.vmem [shape: bf16[8,32], index: 9, kind: input, shape index: {}]   ;;  %s5567_s10 = inlined_call_operand.vmem [shape: f32[1,32], index: 10, kind: input, shape index: {}]   ;;  %s5568_s11 = inlined_call_operand.vmem [shape: bf16[3,96,32], index: 11, kind: input, shape index: {}]   ;;  %s5569_s12 = inlined_call_operand.vmem [shape: f32[3,1,32], index: 12, kind: input, shape index: {}]   ;;  %s5570_s13 = inlined_call_operand.vmem [shape: bf16[3,32,32], index: 13, kind: input, shape index: {}]   ;;  %s5571_s14 = inlined_call_operand.vmem [shape: f32[3,1,32], index: 14, kind: input, shape index: {}]   ;;  %s5572_s15 = inlined_call_operand.vmem [shape: bf16[32,8], index: 15, kind: input, shape index: {}]   ;;  %s5573_s16 = inlined_call_operand.vmem [shape: f32[1,8], index: 16, kind: input, shape index: {}]   ;;  %s5574_s17 = inlined_call_operand.vmem [shape: f32[2,64,8], index: 17, kind: output, shape index: {}]  }
   0x1   :  { %5575 = sst [smem:[#allocation2_spill]] %s5557_s0 }
   0x2   :  { %5576 = sst [smem:[#allocation3_spill]] %s5558_s1 }
   0x3 LB: > { %s3600_s25 = sadd.s32 4294967295, %s4517_s24   ;;  %p3604_p0 = scmp.ge.s32.totalorder %s4517_s24, 1  ;;  %s4517_s24 = sphi %s4611_s24, %s27_s24  }
   0x4   : > { %p487_p1 = scmp.lt.s32.totalorder %s4517_s24, 3 }
   0x6   : > { %p488_p2 = pnand %p3604_p0, %p487_p1 }
   0x7   : > { %s5577_s28 = sld [smem:[#allocation3_spill]] (!%p488_p2)  ;;  %vm592_vm0 = vcmask (!%p488_p2), 1043456   ;;  %p539_p3 = scmp.lt.s32.totalorder (!%p488_p2), %s3600_s25, 1  ;;  %vm579_vm1 = vcmask (!%p488_p2), 64512   ;;  %v4427_v14 = vld [vmem:[%s5560_s3] sm:$0xff] (!%p488_p2)   ;;  %v4428_v15 = vld [vmem:[%s5560_s3 + $0x8] sm:$0xff] (!%p488_p2)   ;;  %v558_v18 = vlaneseq (!%p488_p2) }
   0x8   : > { %491 = sbr.rel (%p488_p2) target bundleno = 4659 (0x1233), region = 88  ;;  %s5578_s18 = sld [smem:[#allocation2_spill]] (!%p488_p2)  ;;  %3945 = vmatprep.subr.bf16.mxu1 (!%p488_p2), %v4427_v14  ;;  %v4429_v16 = vld [vmem:[%s5560_s3 + $0x10] sm:$0xff] (!%p488_p2)   ;;  %v4430_v17 = vld [vmem:[%s5560_s3 + $0x18] sm:$0xff] (!%p488_p2)   ;;  %v3609_v19 = vld [vmem:[%s5559_s2] ss:$0 sm:$0xff] (!%p488_p2) }
   0x9   : > { %3946 = vmatpush3.bf16.msra.mxu1 (!%p488_p2), %v4427_v14  ;;  %v4431_v20 = vld [vmem:[%s5560_s3 + $0x20] sm:$0xff] (!%p488_p2)   ;;  %v4654_v23 = vshrl.u32 (!%p488_p2), %v558_v18, 7  ;;  %v4432_v30 = vld [vmem:[%s5560_s3 + $0x28] sm:$0xff] (!%p488_p2)   ;;  %s4519_s21 = smov (!%p488_p2), 32   ;;  %s4520_s22 = smov (!%p488_p2), 64   ;;  %vm823_vm6 = vcmask (!%p488_p2), 261120  }
   0xa   : > { %3947 = vmatprep.subr.bf16.mxu1 (!%p488_p2), %v4428_v15  ;;  %v4433_v61 = vld [vmem:[%s5562_s5] sm:$0xff] (!%p488_p2)   ;;  %vm832_vm7 = vcmask (!%p488_p2), 523264   ;;  %vm900_vm8 = vcmask (!%p488_p2), 785408  }
   0xb   : > { %vm726_vm2 = vcmp.lt.s32.totalorder (!%p488_p2), %v4654_v23, 7  ;;  %v4696_v51 = vadd.s32 (!%p488_p2), 56, %v4654_v23  ;;  %vm677_vm4 = vcmp.lt.s32.totalorder (!%p488_p2), %v4654_v23, 1  ;;  %vm661_vm5 = vcmp.ge.s32.totalorder (!%p488_p2), %v4654_v23, 1 }
   0xc   : > { %vm1171_vm9 = vcmp.lt.s32.totalorder (!%p488_p2), %v4654_v23, 6  ;;  %vm1122_vm11 = vcmp.lt.s32.totalorder (!%p488_p2), %v4654_v23, 2  ;;  %vm1106_vm12 = vcmp.ge.s32.totalorder (!%p488_p2), %v4654_v23, 2  ;;  %vm1568_vm13 = vcmp.lt.s32.totalorder (!%p488_p2), %v4654_v23, 4 }
   0xd   : > { %v567_v0 = vld [vmem:[%s5577_s28] sm:$0xf] (!%p488_p2)  ;;  %3948 = vmatpush3.bf16.msra.mxu1 (!%p488_p2), %v4428_v15  ;;  %vm717_vm3 = vcmp.lt.s32.totalorder (!%p488_p2), %v4696_v51, 63  ;;  %vm1162_vm10 = vcmp.lt.s32.totalorder (!%p488_p2), %v4696_v51, 62  ;;  %vm1608_vm14 = vcmp.lt.s32.totalorder (!%p488_p2), %v4696_v51, 60  ;;  %vm1552_vm15 = vcmp.ge.s32.totalorder (!%p488_p2), %v4654_v23, 4 }
   0xe   : > { %4175 = vmatprep.subr.msk.bf16.mxu0 (!%p488_p2), %vm592_vm0, %v567_v0  ;;  %v594_v1 = vsel (!%p488_p2), %vm592_vm0, %v567_v0, 0  ;;  %3949 = vmatprep.subr.bf16.mxu1 (!%p488_p2), %v4429_v16 }
   0xf   : > { %3936 = vmatpush3.bf16.msra.mxu0 %v594_v1  ;;  %s5580_s25 = smov (!%p539_p3, %s3600_s25), 1 }
  0x10   : > { %s3815_s29 = sshll.u32 %s5580_s25, 6  ;;  %3965 = vmatprep.subr.bf16.mxu0 %v4433_v61 }
  0x11   : > { %s543_s19 = scalar_lea.vmem %s5578_s18, %s3815_s29  ;;  %3950 = vmatpush3.bf16.msra.mxu1 %v4429_v16  ;;  %s548_s27 = scalar_lea.vmem %s5574_s17, %s3815_s29 }
  0x12   : > { %v550_v2 = vld [vmem:[%s543_s19] sm:$0xff]  ;;  %v551_v3 = vld [vmem:[%s543_s19 + $0x8] sm:$0xff]  ;;  %v552_v4 = vld [vmem:[%s543_s19 + $0x10] sm:$0xff]  ;;  %3951 = vmatprep.subr.bf16.mxu1 %v4430_v17 }
  0x13   : > { %v568_v5 = vpack.c.bf16 %v551_v3, %v550_v2  ;;  %v553_v6 = vld [vmem:[%s543_s19 + $0x18] sm:$0xff]  ;;  %v554_v7 = vld [vmem:[%s543_s19 + $0x20] sm:$0xff]  ;;  %v555_v8 = vld [vmem:[%s543_s19 + $0x28] sm:$0xff] }
  0x14   : > { %v569_v9 = vpack.c.bf16 %v553_v6, %v552_v4  ;;  %v570_v10 = vpack.c.bf16 %v555_v8, %v554_v7  ;;  %v556_v11 = vld [vmem:[%s543_s19 + $0x30] sm:$0xff]  ;;  %v557_v12 = vld [vmem:[%s543_s19 + $0x38] sm:$0xff] }
  0x15   : > { %3937 = vmatprep.mubr.msk.bf16.mxu0 %vm579_vm1, %v568_v5  ;;  %v571_v13 = vpack.c.bf16 %v557_v12, %v556_v11  ;;  %3952 = vmatpush3.bf16.msra.mxu1 %v4430_v17 }
  0x16   : > { %3938 = vmatmul.mubr.msk.bf16.vlgmr.msra.gmra.mrb[0].mxu0 %vm579_vm1, %v569_v9  ;;  %3953 = vmatprep.subr.bf16.mxu1 %v4431_v20 }
  0x17   : > { %3941 = vmatprep.mubr.msk.bf16.mxu0 %vm579_vm1, %v570_v10  ;;  %3966 = vmatpush3.bf16.msra.mxu0 %v4433_v61 }
  0x19   : > { %3954 = vmatpush3.bf16.msra.mxu1 %v4431_v20 }
  0x1a   : > { %3955 = vmatprep.subr.bf16.mxu1 %v4432_v30 }
  0x1d   : > { %3956 = vmatpush3.bf16.msra.mxu1 %v4432_v30 }
  0x1e   : > { %3942 = vmatmul.mubr.msk.bf16.gmra.mrb[4].mxu0 %vm579_vm1, %v571_v13 }
  0xe9   : > { %v3939_v21 = vpop.f32.mrb[0].mxu0 }
  0xea   : > { %v630_v22 = vpop.f32.mrb[1].mxu0  ;;  %v4656_v24 = vadd.f32 %v3939_v21, %v3609_v19 }
  0xeb   : > { %v4658_v25 = vadd.f32 %v3609_v19, %v630_v22  ;;  %v3940_v26 = vpop.f32.mrb[2].mxu0 }
  0xec   : > { %v633_v27 = vpop.f32.mrb[3].mxu0  ;;  %v4662_v29 = vadd.f32 %v3940_v26, %v3609_v19  ;;  %v720_v34 = vrot.slane %v4656_v24, 1  ;;  %v671_v20 = vrot.slane %v4656_v24, 7 }
  0xed   : > { %v4660_v28 = vadd.f32 %v3609_v19, %v633_v27  ;;  %v718_v32 = vrot.slane %v4658_v25, 1  ;;  %v669_v3 = vrot.slane %v4658_v25, 7 }
  0xee   : > { %v721_v38 = vrot.slane %v4662_v29, 1  ;;  %v4192_v44 = vpack.i.bf16 %v4662_v29, %v4656_v24  ;;  %v672_v15 = vrot.slane %v4662_v29, 7 }
  0xef   : > { %v4187_v31 = vpack.i.bf16 %v4660_v28, %v4658_v25  ;;  %v719_v33 = vrot.slane %v4660_v28, 1  ;;  %v670_v4 = vrot.slane %v4660_v28, 7 }
  0xf0   : > { %v731_v50 = vsel %vm726_vm2, %v720_v34, %v721_v38 }
  0xf1   : > { %v3943_v35 = vpop.f32.mrb[4].mxu0  ;;  %4188 = vrot.lane.b32.xlu0 %v4187_v31, %s4519_s21  ;;  %v732_v36 = vsel %vm726_vm2, %v719_v33, %v720_v34  ;;  %v733_v37 = vsel %vm726_vm2, %v718_v32, %v719_v33  ;;  %v684_v13 = vsel %vm677_vm4, %v669_v3, %v670_v4  ;;  %v683_v33 = vsel %vm677_vm4, %v670_v4, %v671_v20 }
  0xf2   : > { %v646_v39 = vpop.f32.mrb[5].mxu0  ;;  %v4197_v40 = vpack.i.bf16 %v732_v36, %v733_v37  ;;  %v4679_v41 = vadd.f32 %v3943_v35, %v3609_v19 }
  0xf3   : > { %v4681_v42 = vadd.f32 %v3609_v19, %v646_v39  ;;  %v3944_v43 = vpop.f32.mrb[6].mxu0 }
  0xf4   : > { %v4685_v45 = vadd.f32 %v3944_v43, %v3609_v19  ;;  %v649_v46 = vpop.f32.mrb[7].mxu0  ;;  %4198 = vrot.lane.b32.xlu1 %v4197_v40, %s4520_s22  ;;  %v724_v52 = vrot.slane %v4679_v41, 1  ;;  %v675_v61 = vrot.slane %v4679_v41, 7 }
  0xf5   : > { %v722_v47 = vrot.slane %v4681_v42, 1  ;;  %v4689_v48 = vadd.f32 %v3609_v19, %v649_v46  ;;  %4193 = vrot.lane.b32.xlu0 %v4192_v44, %s4519_s21  ;;  %v673_v27 = vrot.slane %v4681_v42, 7 }
  0xf6   : > { %v725_v49 = vrot.slane %v4685_v45, 1  ;;  %v4212_v62 = vpack.i.bf16 %v4685_v45, %v4679_v41  ;;  %v676_v2 = vrot.slane %v4685_v45, 7 }
  0xf7   : > { %v723_v53 = vrot.slane %v4689_v48, 1  ;;  %v4202_v54 = vpack.i.bf16 %v4689_v48, %v4681_v42  ;;  %v730_v55 = vsel %vm726_vm2, %v721_v38, %v722_v47  ;;  %v674_v31 = vrot.slane %v4689_v48, 7 }
  0xf8   : > { %v4207_v56 = vpack.i.bf16 %v730_v55, %v731_v50  ;;  %v734_v60 = vsel %vm726_vm2, %v725_v49, %v718_v32  ;;  %v727_v63 = vsel %vm726_vm2, %v724_v52, %v725_v49  ;;  %v685_v8 = vsel %vm677_vm4, %v676_v2, %v669_v3 }
  0xf9   : > { %4203 = vrot.lane.b32.xlu0 %v4202_v54, %s4519_s21  ;;  %v728_v57 = vsel %vm726_vm2, %v723_v53, %v724_v52  ;;  %v729_v58 = vsel %vm726_vm2, %v722_v47, %v723_v53  ;;  %v758_v0 = vsel %vm717_vm3, %v734_v60, 0.0  ;;  %v702_v14 = vsel %vm661_vm5, %v685_v8, 0.0 }
  0xfa   : > { %4208 = vrot.lane.b32.xlu1 %v4207_v56, %s4520_s22  ;;  %v4217_v59 = vpack.i.bf16 %v728_v57, %v729_v58  ;;  %v4222_v1 = vpack.i.bf16 %v758_v0, %v727_v63  ;;  %v682_v32 = vsel %vm677_vm4, %v671_v20, %v672_v15  ;;  %v681_v43 = vsel %vm677_vm4, %v672_v15, %v673_v27 }
  0xfb   : > { %v680_v49 = vsel %vm677_vm4, %v673_v27, %v674_v31  ;;  %v678_v0 = vsel %vm677_vm4, %v675_v61, %v676_v2  ;;  %v4434_v2 = vld [vmem:[%s5562_s5 + $0x8] sm:$0xff]  }
  0xfc   : > { %3967 = vmatprep.subr.bf16.mxu0 %v4434_v2 }
  0xfd   : > { %4218 = vrot.lane.b32.xlu0 %v4217_v59, %s4520_s22  ;;  %3968 = vmatpush3.bf16.msra.mxu0 %v4434_v2 }
  0xfe   : > { %4213 = vrot.lane.b32.xlu1 %v4212_v62, %s4519_s21 }
 0x102   : > { %4223 = vrot.lane.b32.xlu1 %v4222_v1, %s4520_s22  ;;  %v679_v1 = vsel %vm677_vm4, %v674_v31, %v675_v61  ;;  %v4439_v61 = vld [vmem:[%s5560_s3 + $0x50] sm:$0xff]  }
 0x163   : > { %v4189_v5 = vpop.permute.xlu0 %4188 }
 0x164   : > { %v4191_v6 = vunpack.i.h.bf16 %v4189_v5  ;;  %v4190_v7 = vunpack.i.l.bf16 %v4189_v5 }
 0x166   : > { %v4199_v9 = vpop.permute.xlu1 %4198  ;;  %v824_v16 = vsel %vm823_vm6, %v702_v14, %v4190_v7  ;;  %v825_v17 = vsel %vm823_vm6, %v684_v13, %v4191_v6 }
 0x167   : > { %v4201_v10 = vunpack.i.h.bf16 %v4199_v9  ;;  %v4200_v11 = vunpack.i.l.bf16 %v4199_v9  ;;  %v4194_v12 = vpop.permute.xlu0 %4193 }
 0x168   : > { %v4196_v21 = vunpack.i.h.bf16 %v4194_v12  ;;  %v4195_v22 = vunpack.i.l.bf16 %v4194_v12 }
 0x169   : > { %v833_v18 = vsel %vm832_vm7, %v824_v16, %v4200_v11  ;;  %v834_v19 = vsel %vm832_vm7, %v825_v17, %v4201_v10  ;;  %v3614_v10 = vld [vmem:[%s5561_s4] ss:$0 sm:$0xff] }
 0x16a   : > { %v853_v26 = vpack.c.bf16 %v834_v19, %v833_v18  ;;  %v827_v39 = vsel %vm823_vm6, %v682_v32, %v4196_v21  ;;  %v826_v40 = vsel %vm823_vm6, %v683_v33, %v4195_v22 }
 0x16b   : > { %v4204_v30 = vpop.permute.xlu0 %4203 }
 0x16c   : > { %v4209_v34 = vpop.permute.xlu1 %4208  ;;  %3957 = vmatprep.mubr.msk.bf16.mxu1 %vm900_vm8, %v853_v26  ;;  %v4206_v35 = vunpack.i.h.bf16 %v4204_v30  ;;  %v4205_v36 = vunpack.i.l.bf16 %v4204_v30 }
 0x16d   : > { %v4211_v37 = vunpack.i.h.bf16 %v4209_v34  ;;  %v4210_v38 = vunpack.i.l.bf16 %v4209_v34 }
 0x16e   : > { %v829_v55 = vsel %vm823_vm6, %v680_v49, %v4206_v35  ;;  %v828_v56 = vsel %vm823_vm6, %v681_v43, %v4205_v36  ;;  %v4436_v49 = vld [vmem:[%s5560_s3 + $0x38] sm:$0xff]  }
 0x16f   : > { %v836_v44 = vsel %vm832_vm7, %v827_v39, %v4211_v37  ;;  %v835_v46 = vsel %vm832_vm7, %v826_v40, %v4210_v38  ;;  %v4219_v47 = vpop.permute.xlu0 %4218 }
 0x170   : > { %v854_v50 = vpack.c.bf16 %v836_v44, %v835_v46  ;;  %v4221_v52 = vunpack.i.h.bf16 %v4219_v47  ;;  %v4220_v53 = vunpack.i.l.bf16 %v4219_v47  ;;  %v4214_v54 = vpop.permute.xlu1 %4213  ;;  %v4435_v47 = vld [vmem:[%s5560_s3 + $0x30] sm:$0xff]  }
 0x171   : > { %v4216_v59 = vunpack.i.h.bf16 %v4214_v54  ;;  %v4215_v60 = vunpack.i.l.bf16 %v4214_v54  ;;  %3977 = vmatprep.subr.bf16.mxu0 %v4435_v47 }
 0x172   : > { %v837_v57 = vsel %vm832_vm7, %v828_v56, %v4220_v53  ;;  %v838_v58 = vsel %vm832_vm7, %v829_v55, %v4221_v52  ;;  %3958 = vmatmul.mubr.msk.bf16.vlgmr.msra.gmra.mrb[0].mxu1 %vm900_vm8, %v854_v50  ;;  %v4437_v50 = vld [vmem:[%s5560_s3 + $0x40] sm:$0xff]   ;;  %v4438_v52 = vld [vmem:[%s5560_s3 + $0x48] sm:$0xff]  }
 0x173   : > { %v855_v62 = vpack.c.bf16 %v838_v58, %v837_v57  ;;  %v831_v5 = vsel %vm823_vm6, %v678_v0, %v4216_v59  ;;  %v830_v6 = vsel %vm823_vm6, %v679_v1, %v4215_v60  ;;  %v3631_v55 = vld [vmem:[%s5563_s6] ss:$0 sm:$0xff] }
 0x174   : > { %v4224_v63 = vpop.permute.xlu1 %4223 }
 0x175   : > { %v4226_v3 = vunpack.i.h.bf16 %v4224_v63  ;;  %v4225_v4 = vunpack.i.l.bf16 %v4224_v63  ;;  %3961 = vmatprep.mubr.msk.bf16.mxu1 %vm900_vm8, %v855_v62 }
 0x177   : > { %v839_v7 = vsel %vm832_vm7, %v830_v6, %v4225_v4  ;;  %v840_v8 = vsel %vm832_vm7, %v831_v5, %v4226_v3  ;;  %v4440_v6 = vld [vmem:[%s5560_s3 + $0x58] sm:$0xff]  }
 0x178   : > { %v856_v9 = vpack.c.bf16 %v840_v8, %v839_v7 }
 0x17a   : > { %3962 = vmatmul.mubr.msk.bf16.gmra.mrb[4].mxu1 %vm900_vm8, %v856_v9 }
 0x245   : > { %v3959_v11 = vpop.f32.mrb[0].mxu1 }
 0x246   : > { %v956_v12 = vadd.f32 %v3959_v11, %v3614_v10  ;;  %v947_v13 = vpop.f32.mrb[1].mxu1 }
 0x247   : > { %v948_v14 = vadd.f32 %v3614_v10, %v947_v13  ;;  %v3960_v15 = vpop.f32.mrb[2].mxu1 }
 0x248   : > { %v959_v16 = vadd.f32 %v3960_v15, %v3614_v10  ;;  %v950_v17 = vpop.f32.mrb[3].mxu1  ;;  %v980_v19 = vmax.f32 %v956_v12, 0.0 }
 0x249   : > { %v951_v18 = vadd.f32 %v3614_v10, %v950_v17  ;;  %v978_v21 = vmax.f32 %v948_v14, 0.0 }
 0x24a   : > { %v981_v20 = vmax.f32 %v959_v16, 0.0 }
 0x24b   : > { %v979_v22 = vmax.f32 %v951_v18, 0.0 }
 0x24c   : > { %v991_v26 = vpack.c.bf16 %v981_v20, %v980_v19 }
 0x24d   : > { %v990_v27 = vpack.c.bf16 %v979_v22, %v978_v21  ;;  %v3963_v30 = vpop.f32.mrb[4].mxu1 }
 0x24e   : > { %v972_v31 = vadd.f32 %v3963_v30, %v3614_v10  ;;  %v963_v32 = vpop.f32.mrb[5].mxu1 }
 0x24f   : > { %v964_v33 = vadd.f32 %v3614_v10, %v963_v32  ;;  %v3964_v34 = vpop.f32.mrb[6].mxu1  ;;  %3969 = vmatprep.mubr.msk.bf16.mxu0 %vm823_vm6, %v990_v27 }
 0x250   : > { %v975_v35 = vadd.f32 %v3964_v34, %v3614_v10  ;;  %v966_v36 = vpop.f32.mrb[7].mxu1  ;;  %3970 = vmatmul.mubr.msk.bf16.vlgmr.msra.gmra.mrb[8].mxu0 %vm823_vm6, %v991_v26  ;;  %v984_v38 = vmax.f32 %v972_v31, 0.0  ;;  %v4441_v34 = vld [vmem:[%s5562_s5 + $0x10] sm:$0xff]  }
 0x251   : > { %v967_v37 = vadd.f32 %v3614_v10, %v966_v36  ;;  %v982_v40 = vmax.f32 %v964_v33, 0.0  ;;  %3978 = vmatpush3.bf16.msra.mxu0 %v4435_v47  ;;  %3997 = vmatprep.subr.bf16.mxu1 %v4441_v34 }
 0x252   : > { %v985_v39 = vmax.f32 %v975_v35, 0.0  ;;  %3979 = vmatprep.subr.bf16.mxu0 %v4436_v49  ;;  %3998 = vmatpush3.bf16.msra.mxu1 %v4441_v34 }
 0x253   : > { %v983_v43 = vmax.f32 %v967_v37, 0.0 }
 0x254   : > { %v993_v44 = vpack.c.bf16 %v985_v39, %v984_v38 }
 0x255   : > { %v992_v46 = vpack.c.bf16 %v983_v43, %v982_v40  ;;  %3980 = vmatpush3.bf16.msra.mxu0 %v4436_v49 }
 0x256   : > { %3981 = vmatprep.subr.bf16.mxu0 %v4437_v50 }
 0x257   : > { %3973 = vmatprep.mubr.msk.bf16.mxu0 %vm823_vm6, %v992_v46 }
 0x258   : > { %3974 = vmatmul.mubr.msk.bf16.gmra.mrb[12].mxu0 %vm823_vm6, %v993_v44 }
 0x259   : > { %3982 = vmatpush3.bf16.msra.mxu0 %v4437_v50 }
 0x25a   : > { %3983 = vmatprep.subr.bf16.mxu0 %v4438_v52 }
 0x25d   : > { %3984 = vmatpush3.bf16.msra.mxu0 %v4438_v52 }
 0x25e   : > { %3985 = vmatprep.subr.bf16.mxu0 %v4439_v61 }
 0x261   : > { %3986 = vmatpush3.bf16.msra.mxu0 %v4439_v61 }
 0x262   : > { %3987 = vmatprep.subr.bf16.mxu0 %v4440_v6 }
 0x265   : > { %3988 = vmatpush3.bf16.msra.mxu0 %v4440_v6 }
 0x323   : > { %v3971_v53 = vpop.f32.mrb[8].mxu0 }
 0x324   : > { %v1085_v54 = vadd.f32 %v3971_v53, %v4656_v24  ;;  %v1052_v56 = vpop.f32.mrb[9].mxu0 }
 0x325   : > { %v1083_v57 = vadd.f32 %v1052_v56, %v4658_v25  ;;  %v3972_v58 = vpop.f32.mrb[10].mxu0 }
 0x326   : > { %v1086_v59 = vadd.f32 %v3972_v58, %v4662_v29  ;;  %v1055_v60 = vpop.f32.mrb[11].mxu0  ;;  %v4804_v62 = vadd.f32 %v3631_v55, %v1085_v54 }
 0x327   : > { %v4806_v24 = vadd.f32 %v3631_v55, %v1083_v57  ;;  %v1084_v63 = vadd.f32 %v1055_v60, %v4660_v28 }
 0x328   : > { %v4809_v0 = vadd.f32 %v3631_v55, %v1086_v59  ;;  %v1165_v28 = vrot.slane %v4804_v62, 2  ;;  %v1116_v58 = vrot.slane %v4804_v62, 6 }
 0x329   : > { %v4811_v1 = vadd.f32 %v3631_v55, %v1084_v63  ;;  %v1163_v4 = vrot.slane %v4806_v24, 2  ;;  %v1114_v40 = vrot.slane %v4806_v24, 6 }
 0x32a   : > { %v4227_v25 = vpack.i.bf16 %v4809_v0, %v4804_v62  ;;  %v1117_v50 = vrot.slane %v4809_v0, 6 }
 0x32b   : > { %v3975_v29 = vpop.f32.mrb[12].mxu0  ;;  %v4232_v3 = vpack.i.bf16 %v4811_v1, %v4806_v24  ;;  %v1164_v5 = vrot.slane %v4811_v1, 2  ;;  %v1115_v44 = vrot.slane %v4811_v1, 6 }
 0x32c   : > { %v1089_v7 = vadd.f32 %v3975_v29, %v4679_v41  ;;  %4228 = vrot.lane.b32.xlu1 %v4227_v25, %s4519_s21  ;;  %v1068_v8 = vpop.f32.mrb[13].mxu0  ;;  %v1166_v41 = vrot.slane %v4809_v0, 2  ;;  %v1127_v6 = vsel %vm1122_vm11, %v1116_v58, %v1117_v50 }
 0x32d   : > { %v1087_v9 = vadd.f32 %v1068_v8, %v4681_v42  ;;  %4233 = vrot.lane.b32.xlu0 %v4232_v3, %s4519_s21  ;;  %v3976_v2 = vpop.f32.mrb[14].mxu0  ;;  %v1177_v10 = vsel %vm1171_vm9, %v1164_v5, %v1165_v28  ;;  %v1178_v11 = vsel %vm1171_vm9, %v1163_v4, %v1164_v5  ;;  %v1129_v54 = vsel %vm1122_vm11, %v1114_v40, %v1115_v44 }
 0x32e   : > { %v1090_v12 = vadd.f32 %v3976_v2, %v4685_v45  ;;  %v1071_v13 = vpop.f32.mrb[15].mxu0  ;;  %v4237_v14 = vpack.i.bf16 %v1177_v10, %v1178_v11  ;;  %v4834_v15 = vadd.f32 %v3631_v55, %v1089_v7  ;;  %v1176_v19 = vsel %vm1171_vm9, %v1165_v28, %v1166_v41 }
 0x32f   : > { %v4836_v16 = vadd.f32 %v3631_v55, %v1087_v9  ;;  %v1088_v42 = vadd.f32 %v1071_v13, %v4689_v48  ;;  %v1128_v7 = vsel %vm1122_vm11, %v1115_v44, %v1116_v58 }
 0x330   : > { %v4839_v17 = vadd.f32 %v3631_v55, %v1090_v12  ;;  %v1169_v26 = vrot.slane %v4834_v15, 2  ;;  %v1120_v34 = vrot.slane %v4834_v15, 6 }
 0x331   : > { %v4841_v18 = vadd.f32 %v3631_v55, %v1088_v42  ;;  %4238 = vrot.lane.b32.xlu0 %v4237_v14, %s4520_s22  ;;  %v1167_v45 = vrot.slane %v4836_v16, 2  ;;  %v1118_v3 = vrot.slane %v4836_v16, 6 }
 0x332   : > { %v1170_v20 = vrot.slane %v4839_v17, 2  ;;  %v4252_v35 = vpack.i.bf16 %v4839_v17, %v4834_v15  ;;  %v1121_v39 = vrot.slane %v4839_v17, 6 }
 0x333   : > { %v4242_v21 = vpack.i.bf16 %v4841_v18, %v4836_v16  ;;  %v1175_v48 = vsel %vm1171_vm9, %v1166_v41, %v1167_v45  ;;  %v1168_v22 = vrot.slane %v4841_v18, 2  ;;  %v1119_v28 = vrot.slane %v4841_v18, 6 }
 0x334   : > { %v4247_v27 = vpack.i.bf16 %v1175_v48, %v1176_v19  ;;  %v1179_v33 = vsel %vm1171_vm9, %v1170_v20, %v1163_v4  ;;  %v1172_v36 = vsel %vm1171_vm9, %v1169_v26, %v1170_v20  ;;  %v1130_v49 = vsel %vm1122_vm11, %v1121_v39, %v1114_v40 }
 0x335   : > { %4243 = vrot.lane.b32.xlu0 %v4242_v21, %s4519_s21  ;;  %v1173_v30 = vsel %vm1171_vm9, %v1168_v22, %v1169_v26  ;;  %v1174_v31 = vsel %vm1171_vm9, %v1167_v45, %v1168_v22  ;;  %v1203_v37 = vsel %vm1162_vm10, %v1179_v33, 0.0  ;;  %v1147_v55 = vsel %vm1106_vm12, %v1130_v49, 0.0 }
 0x336   : > { %4248 = vrot.lane.b32.xlu1 %v4247_v27, %s4520_s22  ;;  %v4257_v32 = vpack.i.bf16 %v1173_v30, %v1174_v31  ;;  %v4262_v38 = vpack.i.bf16 %v1203_v37, %v1172_v36  ;;  %v1126_v14 = vsel %vm1122_vm11, %v1117_v50, %v1118_v3  ;;  %v1125_v19 = vsel %vm1122_vm11, %v1118_v3, %v1119_v28 }
 0x337   : > { %v1123_v37 = vsel %vm1122_vm11, %v1120_v34, %v1121_v39  ;;  %v4442_v39 = vld [vmem:[%s5562_s5 + $0x18] sm:$0xff]  }
 0x338   : > { %3999 = vmatprep.subr.bf16.mxu1 %v4442_v39 }
 0x339   : > { %4258 = vrot.lane.b32.xlu0 %v4257_v32, %s4520_s22  ;;  %4000 = vmatpush3.bf16.msra.mxu1 %v4442_v39 }
 0x33a   : > { %4253 = vrot.lane.b32.xlu1 %v4252_v35, %s4519_s21 }
 0x33e   : > { %4263 = vrot.lane.b32.xlu1 %v4262_v38, %s4520_s22  ;;  %v1124_v38 = vsel %vm1122_vm11, %v1119_v28, %v1120_v34 }
 0x39e   : > { %v4229_v52 = vpop.permute.xlu1 %4228 }
 0x39f   : > { %v4234_v43 = vpop.permute.xlu0 %4233  ;;  %v4231_v61 = vunpack.i.h.bf16 %v4229_v52  ;;  %v4230_v63 = vunpack.i.l.bf16 %v4229_v52  ;;  %v3645_v52 = vld [vmem:[%s5561_s4 + $0x1] ss:$0 sm:$0xff] }
 0x3a0   : > { %v4236_v46 = vunpack.i.h.bf16 %v4234_v43  ;;  %v4235_v47 = vunpack.i.l.bf16 %v4234_v43 }
 0x3a1   : > { %v1270_v12 = vsel %vm823_vm6, %v1128_v7, %v4230_v63  ;;  %v1271_v13 = vsel %vm823_vm6, %v1127_v6, %v4231_v61 }
 0x3a2   : > { %v1268_v59 = vsel %vm823_vm6, %v1147_v55, %v4235_v47  ;;  %v1269_v60 = vsel %vm823_vm6, %v1129_v54, %v4236_v46 }
 0x3a3   : > { %v4239_v53 = vpop.permute.xlu0 %4238 }
 0x3a4   : > { %v4241_v56 = vunpack.i.h.bf16 %v4239_v53  ;;  %v4240_v57 = vunpack.i.l.bf16 %v4239_v53 }
 0x3a6   : > { %v1276_v25 = vsel %vm832_vm7, %v1268_v59, %v4240_v57  ;;  %v1277_v29 = vsel %vm832_vm7, %v1269_v60, %v4241_v56 }
 0x3a7   : > { %v1297_v4 = vpack.c.bf16 %v1277_v29, %v1276_v25  ;;  %v4244_v5 = vpop.permute.xlu0 %4243 }
 0x3a8   : > { %v4249_v8 = vpop.permute.xlu1 %4248  ;;  %v4246_v9 = vunpack.i.h.bf16 %v4244_v5  ;;  %v4245_v2 = vunpack.i.l.bf16 %v4244_v5 }
 0x3a9   : > { %v4251_v10 = vunpack.i.h.bf16 %v4249_v8  ;;  %v4250_v11 = vunpack.i.l.bf16 %v4249_v8  ;;  %3989 = vmatprep.mubr.msk.bf16.mxu0 %vm900_vm8, %v1297_v4 }
 0x3aa   : > { %v1272_v26 = vsel %vm823_vm6, %v1126_v14, %v4245_v2  ;;  %v1273_v27 = vsel %vm823_vm6, %v1125_v19, %v4246_v9  ;;  %v4444_v19 = vld [vmem:[%s5560_s3 + $0x68] sm:$0xff]  }
 0x3ab   : > { %v1279_v41 = vsel %vm832_vm7, %v1271_v13, %v4251_v10  ;;  %v1278_v42 = vsel %vm832_vm7, %v1270_v12, %v4250_v11  ;;  %v4259_v45 = vpop.permute.xlu0 %4258 }
 0x3ac   : > { %v1298_v20 = vpack.c.bf16 %v1279_v41, %v1278_v42  ;;  %v4261_v21 = vunpack.i.h.bf16 %v4259_v45  ;;  %v4260_v48 = vunpack.i.l.bf16 %v4259_v45  ;;  %v4254_v22 = vpop.permute.xlu1 %4253  ;;  %v4443_v45 = vld [vmem:[%s5560_s3 + $0x60] sm:$0xff]  }
 0x3ad   : > { %v4256_v32 = vunpack.i.h.bf16 %v4254_v22  ;;  %v4255_v33 = vunpack.i.l.bf16 %v4254_v22  ;;  %4009 = vmatprep.subr.bf16.mxu1 %v4443_v45 }
 0x3ae   : > { %v1280_v30 = vsel %vm832_vm7, %v1272_v26, %v4260_v48  ;;  %v1281_v31 = vsel %vm832_vm7, %v1273_v27, %v4261_v21  ;;  %3990 = vmatmul.mubr.msk.bf16.vlgmr.msra.gmra.mrb[16].mxu0 %vm900_vm8, %v1298_v20  ;;  %v4445_v20 = vld [vmem:[%s5560_s3 + $0x70] sm:$0xff]   ;;  %v4446_v21 = vld [vmem:[%s5560_s3 + $0x78] sm:$0xff]   ;;  %v3667_v26 = vld [vmem:[%s5563_s6 + $0x1] ss:$0 sm:$0xff] }
 0x3af   : > { %v1299_v35 = vpack.c.bf16 %v1281_v31, %v1280_v30  ;;  %v1274_v44 = vsel %vm823_vm6, %v1124_v38, %v4255_v33  ;;  %v1275_v46 = vsel %vm823_vm6, %v1123_v37, %v4256_v32 }
 0x3b0   : > { %v4264_v36 = vpop.permute.xlu1 %4263 }
 0x3b1   : > { %v4266_v40 = vunpack.i.h.bf16 %v4264_v36  ;;  %v4265_v43 = vunpack.i.l.bf16 %v4264_v36  ;;  %3993 = vmatprep.mubr.msk.bf16.mxu0 %vm900_vm8, %v1299_v35 }
 0x3b3   : > { %v1282_v47 = vsel %vm832_vm7, %v1274_v44, %v4265_v43  ;;  %v1283_v49 = vsel %vm832_vm7, %v1275_v46, %v4266_v40  ;;  %v4448_v46 = vld [vmem:[%s5560_s3 + $0x88] sm:$0xff]  }
 0x3b4   : > { %v1300_v50 = vpack.c.bf16 %v1283_v49, %v1282_v47 }
 0x3b6   : > { %3994 = vmatmul.mubr.msk.bf16.gmra.mrb[20].mxu0 %vm900_vm8, %v1300_v50 }
 0x481   : > { %v3991_v53 = vpop.f32.mrb[16].mxu0 }
 0x482   : > { %v1400_v54 = vadd.f32 %v3991_v53, %v3645_v52  ;;  %v1391_v55 = vpop.f32.mrb[17].mxu0 }
 0x483   : > { %v1392_v56 = vadd.f32 %v3645_v52, %v1391_v55  ;;  %v3992_v57 = vpop.f32.mrb[18].mxu0 }
 0x484   : > { %v1403_v58 = vadd.f32 %v3992_v57, %v3645_v52  ;;  %v1394_v59 = vpop.f32.mrb[19].mxu0  ;;  %v1424_v61 = vmax.f32 %v1400_v54, 0.0 }
 0x485   : > { %v1395_v60 = vadd.f32 %v3645_v52, %v1394_v59  ;;  %v1422_v25 = vmax.f32 %v1392_v56, 0.0 }
 0x486   : > { %v1425_v63 = vmax.f32 %v1403_v58, 0.0 }
 0x487   : > { %v1423_v29 = vmax.f32 %v1395_v60, 0.0 }
 0x488   : > { %v1436_v3 = vpack.c.bf16 %v1425_v63, %v1424_v61 }
 0x489   : > { %v1435_v4 = vpack.c.bf16 %v1423_v29, %v1422_v25  ;;  %v3995_v5 = vpop.f32.mrb[20].mxu0 }
 0x48a   : > { %v1416_v28 = vadd.f32 %v3995_v5, %v3645_v52  ;;  %v1407_v6 = vpop.f32.mrb[21].mxu0 }
 0x48b   : > { %v1408_v7 = vadd.f32 %v3645_v52, %v1407_v6  ;;  %v3996_v8 = vpop.f32.mrb[22].mxu0  ;;  %4001 = vmatprep.mubr.msk.bf16.mxu1 %vm823_vm6, %v1435_v4 }
 0x48c   : > { %v1419_v9 = vadd.f32 %v3996_v8, %v3645_v52  ;;  %v1410_v2 = vpop.f32.mrb[23].mxu0  ;;  %4002 = vmatmul.mubr.msk.bf16.vlgmr.msra.gmra.mrb[8].mxu1 %vm823_vm6, %v1436_v3  ;;  %v1428_v11 = vmax.f32 %v1416_v28, 0.0  ;;  %v4449_v8 = vld [vmem:[%s5562_s5 + $0x20] sm:$0xff]  }
 0x48d   : > { %v1411_v10 = vadd.f32 %v3645_v52, %v1410_v2  ;;  %v1426_v13 = vmax.f32 %v1408_v7, 0.0  ;;  %4010 = vmatpush3.bf16.msra.mxu1 %v4443_v45  ;;  %4029 = vmatprep.subr.bf16.mxu0 %v4449_v8 }
 0x48e   : > { %v1429_v12 = vmax.f32 %v1419_v9, 0.0  ;;  %4011 = vmatprep.subr.bf16.mxu1 %v4444_v19  ;;  %4030 = vmatpush3.bf16.msra.mxu0 %v4449_v8 }
 0x48f   : > { %v1427_v14 = vmax.f32 %v1411_v10, 0.0 }
 0x490   : > { %v1438_v41 = vpack.c.bf16 %v1429_v12, %v1428_v11 }
 0x491   : > { %v1437_v42 = vpack.c.bf16 %v1427_v14, %v1426_v13  ;;  %4012 = vmatpush3.bf16.msra.mxu1 %v4444_v19 }
 0x492   : > { %4013 = vmatprep.subr.bf16.mxu1 %v4445_v20 }
 0x493   : > { %4005 = vmatprep.mubr.msk.bf16.mxu1 %vm823_vm6, %v1437_v42 }
 0x494   : > { %4006 = vmatmul.mubr.msk.bf16.gmra.mrb[12].mxu1 %vm823_vm6, %v1438_v41 }
 0x495   : > { %4014 = vmatpush3.bf16.msra.mxu1 %v4445_v20 }
 0x496   : > { %4015 = vmatprep.subr.bf16.mxu1 %v4446_v21 }
 0x499   : > { %4016 = vmatpush3.bf16.msra.mxu1 %v4446_v21 }
 0x55f   : > { %v4003_v48 = vpop.f32.mrb[8].mxu1 }
 0x560   : > { %v1530_v22 = vadd.f32 %v4003_v48, %v4804_v62  ;;  %v1497_v27 = vpop.f32.mrb[9].mxu1  ;;  %v4447_v62 = vld [vmem:[%s5560_s3 + $0x80] sm:$0xff]  }
 0x561   : > { %v1528_v30 = vadd.f32 %v1497_v27, %v4806_v24  ;;  %v4004_v31 = vpop.f32.mrb[10].mxu1  ;;  %4017 = vmatprep.subr.bf16.mxu1 %v4447_v62 }
 0x562   : > { %v1531_v32 = vadd.f32 %v4004_v31, %v4809_v0  ;;  %v1500_v33 = vpop.f32.mrb[11].mxu1  ;;  %v4951_v34 = vadd.f32 %v3667_v26, %v1530_v22  ;;  %4018 = vmatpush3.bf16.msra.mxu1 %v4447_v62 }
 0x563   : > { %v4953_v35 = vadd.f32 %v3667_v26, %v1528_v30  ;;  %v1529_v36 = vadd.f32 %v1500_v33, %v4811_v1  ;;  %4019 = vmatprep.subr.bf16.mxu1 %v4448_v46 }
 0x564   : > { %v4959_v37 = vadd.f32 %v3667_v26, %v1531_v32  ;;  %v1562_v0 = vrot.slane %v4951_v34, 4 }
 0x565   : > { %v4961_v38 = vadd.f32 %v3667_v26, %v1529_v36  ;;  %v1560_v40 = vrot.slane %v4953_v35, 4 }
 0x566   : > { %v4267_v24 = vpack.i.bf16 %v4959_v37, %v4951_v34  ;;  %v1563_v54 = vrot.slane %v4959_v37, 4  ;;  %4020 = vmatpush3.bf16.msra.mxu1 %v4448_v46 }
 0x567   : > { %v1561_v1 = vrot.slane %v4961_v38, 4  ;;  %v4007_v43 = vpop.f32.mrb[12].mxu1  ;;  %v4272_v44 = vpack.i.bf16 %v4961_v38, %v4953_v35 }
 0x568   : > { %v1534_v47 = vadd.f32 %v4007_v43, %v4834_v15  ;;  %4268 = vrot.lane.b32.xlu1 %v4267_v24, %s4519_s21  ;;  %v1513_v49 = vpop.f32.mrb[13].mxu1  ;;  %v1573_v63 = vsel %vm1568_vm13, %v1562_v0, %v1563_v54 }
 0x569   : > { %v1532_v50 = vadd.f32 %v1513_v49, %v4836_v16  ;;  %4273 = vrot.lane.b32.xlu0 %v4272_v44, %s4519_s21  ;;  %v4008_v39 = vpop.f32.mrb[14].mxu1  ;;  %v4980_v52 = vsel %vm1568_vm13, %v1561_v1, %v1562_v0  ;;  %v1575_v53 = vsel %vm1568_vm13, %v1560_v40, %v1561_v1 }
 0x56a   : > { %v1535_v15 = vadd.f32 %v4008_v39, %v4839_v17  ;;  %v1516_v55 = vpop.f32.mrb[15].mxu1  ;;  %v4277_v56 = vpack.i.bf16 %v4980_v52, %v1575_v53  ;;  %v4987_v16 = vadd.f32 %v3667_v26, %v1534_v47 }
 0x56b   : > { %v4989_v57 = vadd.f32 %v3667_v26, %v1532_v50  ;;  %v1533_v58 = vadd.f32 %v1516_v55, %v4841_v18 }
 0x56c   : > { %v4992_v59 = vadd.f32 %v3667_v26, %v1535_v15  ;;  %v1566_v25 = vrot.slane %v4987_v16, 4 }
 0x56d   : > { %v1564_v60 = vrot.slane %v4989_v57, 4  ;;  %v4995_v61 = vadd.f32 %v3667_v26, %v1533_v58  ;;  %4278 = vrot.lane.b32.xlu0 %v4277_v56, %s4520_s22 }
 0x56e   : > { %v1567_v17 = vrot.slane %v4992_v59, 4  ;;  %v4292_v9 = vpack.i.bf16 %v4992_v59, %v4987_v16 }
 0x56f   : > { %v1565_v29 = vrot.slane %v4995_v61, 4  ;;  %v4282_v18 = vpack.i.bf16 %v4995_v61, %v4989_v57  ;;  %v1572_v3 = vsel %vm1568_vm13, %v1563_v54, %v1564_v60 }
 0x570   : > { %v4287_v4 = vpack.i.bf16 %v1572_v3, %v1573_v63  ;;  %v1576_v7 = vsel %vm1568_vm13, %v1567_v17, %v1560_v40  ;;  %v1569_v2 = vsel %vm1568_vm13, %v1566_v25, %v1567_v17 }
 0x571   : > { %4283 = vrot.lane.b32.xlu0 %v4282_v18, %s4519_s21  ;;  %v1570_v5 = vsel %vm1568_vm13, %v1565_v29, %v1566_v25  ;;  %v1571_v28 = vsel %vm1568_vm13, %v1564_v60, %v1565_v29  ;;  %v1632_v10 = vsel %vm1608_vm14, %v1576_v7, 0.0  ;;  %v1593_v45 = vsel %vm1552_vm15, %v1576_v7, 0.0 }
 0x572   : > { %4288 = vrot.lane.b32.xlu1 %v4287_v4, %s4520_s22  ;;  %v4297_v6 = vpack.i.bf16 %v1570_v5, %v1571_v28  ;;  %v4302_v11 = vpack.i.bf16 %v1632_v10, %v1569_v2 }
 0x575   : > { %4298 = vrot.lane.b32.xlu0 %v4297_v6, %s4520_s22  ;;  %v4451_v6 = vld [vmem:[%s5564_s7] sm:$0xff]  }
 0x576   : > { %4293 = vrot.lane.b32.xlu1 %v4292_v9, %s4519_s21 }
 0x57a   : > { %4303 = vrot.lane.b32.xlu1 %v4302_v11, %s4520_s22 }
 0x5da   : > { %v4269_v41 = vpop.permute.xlu1 %4268 }
 0x5db   : > { %v4274_v12 = vpop.permute.xlu0 %4273  ;;  %v4271_v22 = vunpack.i.h.bf16 %v4269_v41  ;;  %v4270_v26 = vunpack.i.l.bf16 %v4269_v41 }
 0x5dc   : > { %v4276_v13 = vunpack.i.h.bf16 %v4274_v12  ;;  %v4275_v14 = vunpack.i.l.bf16 %v4274_v12 }
 0x5dd   : > { %v1699_v40 = vsel %vm823_vm6, %v4980_v52, %v4270_v26  ;;  %v1700_v1 = vsel %vm823_vm6, %v1573_v63, %v4271_v22 }
 0x5de   : > { %v1698_v21 = vsel %vm823_vm6, %v1575_v53, %v4276_v13  ;;  %v1697_v48 = vsel %vm823_vm6, %v1593_v45, %v4275_v14 }
 0x5df   : > { %v4279_v42 = vpop.permute.xlu0 %4278 }
 0x5e0   : > { %v4281_v19 = vunpack.i.h.bf16 %v4279_v42  ;;  %v4280_v20 = vunpack.i.l.bf16 %v4279_v42 }
 0x5e2   : > { %v1705_v27 = vsel %vm832_vm7, %v1697_v48, %v4280_v20  ;;  %v1706_v30 = vsel %vm832_vm7, %v1698_v21, %v4281_v19 }
 0x5e3   : > { %v1726_v31 = vpack.c.bf16 %v1706_v30, %v1705_v27  ;;  %v4284_v32 = vpop.permute.xlu0 %4283 }
 0x5e4   : > { %v4289_v33 = vpop.permute.xlu1 %4288  ;;  %v4286_v36 = vunpack.i.h.bf16 %v4284_v32  ;;  %v4285_v62 = vunpack.i.l.bf16 %v4284_v32 }
 0x5e5   : > { %v4291_v24 = vunpack.i.h.bf16 %v4289_v33  ;;  %v4290_v0 = vunpack.i.l.bf16 %v4289_v33  ;;  %4021 = vmatprep.mubr.msk.bf16.mxu1 %vm900_vm8, %v1726_v31 }
 0x5e6   : > { %v1701_v53 = vsel %vm823_vm6, %v1572_v3, %v4285_v62  ;;  %v1702_v54 = vsel %vm823_vm6, %v1571_v28, %v4286_v36  ;;  %v4450_v28 = vld [vmem:[%s5562_s5 + $0x28] sm:$0xff]  }
 0x5e7   : > { %v1708_v43 = vsel %vm832_vm7, %v1700_v1, %v4291_v24  ;;  %v1707_v44 = vsel %vm832_vm7, %v1699_v40, %v4290_v0  ;;  %v4299_v46 = vpop.permute.xlu0 %4298  ;;  %4031 = vmatprep.subr.bf16.mxu0 %v4450_v28  ;;  %v4452_v1 = vld [vmem:[%s5564_s7 + $0x8] sm:$0xff]  }
 0x5e8   : > { %v1727_v47 = vpack.c.bf16 %v1708_v43, %v1707_v44  ;;  %v4301_v49 = vunpack.i.h.bf16 %v4299_v46  ;;  %v4300_v50 = vunpack.i.l.bf16 %v4299_v46  ;;  %v4294_v39 = vpop.permute.xlu1 %4293  ;;  %4032 = vmatpush3.bf16.msra.mxu0 %v4450_v28 }
 0x5e9   : > { %v4296_v52 = vunpack.i.h.bf16 %v4294_v39  ;;  %v4295_v56 = vunpack.i.l.bf16 %v4294_v39  ;;  %4041 = vmatprep.subr.bf16.mxu0 %v4451_v6 }
 0x5ea   : > { %v1710_v15 = vsel %vm832_vm7, %v1702_v54, %v4301_v49  ;;  %v1709_v55 = vsel %vm832_vm7, %v1701_v53, %v4300_v50  ;;  %4022 = vmatmul.mubr.msk.bf16.vlgmr.msra.gmra.mrb[16].mxu1 %vm900_vm8, %v1727_v47  ;;  %v3703_v47 = vld [vmem:[%s5563_s6 + $0x2] ss:$0 sm:$0xff] }
 0x5eb   : > { %v1728_v58 = vpack.c.bf16 %v1710_v15, %v1709_v55  ;;  %v1703_v25 = vsel %vm823_vm6, %v1570_v5, %v4295_v56  ;;  %v1704_v29 = vsel %vm823_vm6, %v1569_v2, %v4296_v52  ;;  %v3681_v5 = vld [vmem:[%s5561_s4 + $0x2] ss:$0 sm:$0xff] }
 0x5ec   : > { %v4304_v60 = vpop.permute.xlu1 %4303 }
 0x5ed   : > { %v4306_v17 = vunpack.i.h.bf16 %v4304_v60  ;;  %v4305_v63 = vunpack.i.l.bf16 %v4304_v60  ;;  %4025 = vmatprep.mubr.msk.bf16.mxu1 %vm900_vm8, %v1728_v58 }
 0x5ef   : > { %v1711_v18 = vsel %vm832_vm7, %v1703_v25, %v4305_v63  ;;  %v1712_v3 = vsel %vm832_vm7, %v1704_v29, %v4306_v17 }
 0x5f0   : > { %v1729_v4 = vpack.c.bf16 %v1712_v3, %v1711_v18 }
 0x5f2   : > { %4026 = vmatmul.mubr.msk.bf16.gmra.mrb[20].mxu1 %vm900_vm8, %v1729_v4 }
 0x6bd   : > { %v4023_v7 = vpop.f32.mrb[16].mxu1 }
 0x6be   : > { %v1829_v8 = vadd.f32 %v4023_v7, %v3681_v5  ;;  %v1820_v9 = vpop.f32.mrb[17].mxu1 }
 0x6bf   : > { %v1821_v2 = vadd.f32 %v3681_v5, %v1820_v9  ;;  %v4024_v10 = vpop.f32.mrb[18].mxu1 }
 0x6c0   : > { %v1832_v11 = vadd.f32 %v4024_v10, %v3681_v5  ;;  %v1823_v12 = vpop.f32.mrb[19].mxu1  ;;  %v1853_v14 = vmax.f32 %v1829_v8, 0.0 }
 0x6c1   : > { %v1824_v13 = vadd.f32 %v3681_v5, %v1823_v12  ;;  %v1851_v42 = vmax.f32 %v1821_v2, 0.0 }
 0x6c2   : > { %v1854_v41 = vmax.f32 %v1832_v11, 0.0 }
 0x6c3   : > { %v1852_v45 = vmax.f32 %v1824_v13, 0.0 }
 0x6c4   : > { %v1865_v19 = vpack.c.bf16 %v1854_v41, %v1853_v14 }
 0x6c5   : > { %v1864_v20 = vpack.c.bf16 %v1852_v45, %v1851_v42  ;;  %v4027_v21 = vpop.f32.mrb[20].mxu1 }
 0x6c6   : > { %v1845_v48 = vadd.f32 %v4027_v21, %v3681_v5  ;;  %v1836_v22 = vpop.f32.mrb[21].mxu1 }
 0x6c7   : > { %v1837_v26 = vadd.f32 %v3681_v5, %v1836_v22  ;;  %v4028_v27 = vpop.f32.mrb[22].mxu1  ;;  %4033 = vmatprep.mubr.msk.bf16.mxu0 %vm823_vm6, %v1864_v20 }
 0x6c8   : > { %v1848_v30 = vadd.f32 %v4028_v27, %v3681_v5  ;;  %v1839_v31 = vpop.f32.mrb[23].mxu1  ;;  %4034 = vmatmul.mubr.msk.bf16.vlgmr.msra.gmra.mrb[24].mxu0 %vm823_vm6, %v1865_v19  ;;  %v1857_v33 = vmax.f32 %v1845_v48, 0.0 }
 0x6c9   : > { %v1840_v32 = vadd.f32 %v3681_v5, %v1839_v31  ;;  %4042 = vmatpush3.bf16.msra.mxu0 %v4451_v6  ;;  %v1855_v62 = vmax.f32 %v1837_v26, 0.0 }
 0x6ca   : > { %v1858_v36 = vmax.f32 %v1848_v30, 0.0  ;;  %4043 = vmatprep.subr.bf16.mxu0 %v4452_v1 }
 0x6cb   : > { %v1856_v24 = vmax.f32 %v1840_v32, 0.0 }
 0x6cc   : > { %v1867_v0 = vpack.c.bf16 %v1858_v36, %v1857_v33 }
 0x6cd   : > { %v1866_v40 = vpack.c.bf16 %v1856_v24, %v1855_v62  ;;  %4044 = vmatpush3.bf16.msra.mxu0 %v4452_v1 }
 0x6cf   : > { %4037 = vmatprep.mubr.msk.bf16.mxu0 %vm823_vm6, %v1866_v40 }
 0x6d0   : > { %4038 = vmatmul.mubr.msk.bf16.gmra.mrb[28].mxu0 %vm823_vm6, %v1867_v0 }
 0x79b   : > { %v4035_v43 = vpop.f32.mrb[24].mxu0 }
 0x79c   : > { %v1959_v44 = vadd.f32 %v4035_v43, %v4951_v34  ;;  %v1926_v46 = vpop.f32.mrb[25].mxu0 }
 0x79d   : > { %v1957_v49 = vadd.f32 %v1926_v46, %v4953_v35  ;;  %v4036_v50 = vpop.f32.mrb[26].mxu0 }
 0x79e   : > { %v1960_v39 = vadd.f32 %v4036_v50, %v4959_v37  ;;  %v1929_v53 = vpop.f32.mrb[27].mxu0  ;;  %v1975_v15 = vadd.f32 %v3703_v47, %v1959_v44 }
 0x79f   : > { %v1958_v54 = vadd.f32 %v1929_v53, %v4961_v38  ;;  %v1973_v52 = vadd.f32 %v3703_v47, %v1957_v49 }
 0x7a0   : > { %v1976_v55 = vadd.f32 %v3703_v47, %v1960_v39 }
 0x7a1   : > { %v1974_v56 = vadd.f32 %v3703_v47, %v1958_v54 }
 0x7a2   : > { %v1986_v58 = vpack.c.bf16 %v1976_v55, %v1975_v15 }
 0x7a3   : > { %v1985_v60 = vpack.c.bf16 %v1974_v56, %v1973_v52  ;;  %v4039_v34 = vpop.f32.mrb[28].mxu0 }
 0x7a4   : > { %v1963_v17 = vadd.f32 %v4039_v34, %v4987_v16  ;;  %v1942_v63 = vpop.f32.mrb[29].mxu0  ;;  %v3704_v16 = vld [vmem:[%s5565_s8] ss:$0 sm:$0xff] }
 0x7a5   : > { %v1961_v25 = vadd.f32 %v1942_v63, %v4989_v57  ;;  %v4040_v29 = vpop.f32.mrb[30].mxu0  ;;  %4045 = vmatprep.mubr.msk.bf16.mxu0 %vm823_vm6, %v1985_v60 }
 0x7a6   : > { %v1964_v35 = vadd.f32 %v4040_v29, %v4992_v59  ;;  %v1945_v37 = vpop.f32.mrb[31].mxu0  ;;  %4046 = vmatmul.mubr.msk.bf16.vlgmr.msra.gmra.mrb[32].mxu0 %vm823_vm6, %v1986_v58  ;;  %v1979_v18 = vadd.f32 %v3703_v47, %v1963_v17 }
 0x7a7   : > { %v1962_v38 = vadd.f32 %v1945_v37, %v4995_v61  ;;  %v1977_v4 = vadd.f32 %v3703_v47, %v1961_v25 }
 0x7a8   : > { %v1980_v3 = vadd.f32 %v3703_v47, %v1964_v35 }
 0x7a9   : > { %v1978_v28 = vadd.f32 %v3703_v47, %v1962_v38 }
 0x7aa   : > { %v1988_v6 = vpack.c.bf16 %v1980_v3, %v1979_v18 }
 0x7ab   : > { %v1987_v5 = vpack.c.bf16 %v1978_v28, %v1977_v4 }
 0x7ad   : > { %4049 = vmatprep.mubr.msk.bf16.mxu0 %vm823_vm6, %v1987_v5 }
 0x7ae   : > { %4050 = vmatmul.mubr.msk.bf16.gmra.mrb[36].mxu0 %vm823_vm6, %v1988_v6 }
 0x879   : > { %v4047_v57 = vpop.f32.mrb[32].mxu0 }
 0x87a   : > { %v2054_v59 = vpop.f32.mrb[33].mxu0  ;;  %v2063_v61 = vadd.f32 %v4047_v57, %v3704_v16 }
 0x87b   : > { %v2055_v7 = vadd.f32 %v3704_v16, %v2054_v59  ;;  %v4048_v8 = vpop.f32.mrb[34].mxu0 }
 0x87c   : > { %v2057_v9 = vpop.f32.mrb[35].mxu0  ;;  %v2066_v12 = vadd.f32 %v4048_v8, %v3704_v16  ;;  %v2091_v14 = vsel %vm579_vm1, %v2063_v61, -inf }
 0x87d   : > { %v2058_v2 = vadd.f32 %v3704_v16, %v2057_v9  ;;  %v2085_v10 = vsel %vm579_vm1, %v2055_v7, -inf }
 0x87e   : > { %2086 = vmax.xlane.f32.xlu0 %v2085_v10  ;;  %v2094_v48 = vsel %vm579_vm1, %v2066_v12, -inf }
 0x87f   : > { %v2088_v11 = vsel %vm579_vm1, %v2058_v2, -inf }
 0x880   : > { %2089 = vmax.xlane.f32.xlu1 %v2088_v11 }
 0x881   : > { %v4051_v13 = vpop.f32.mrb[36].mxu0 }
 0x882   : > { %2092 = vmax.xlane.f32.xlu0 %v2091_v14  ;;  %v2070_v41 = vpop.f32.mrb[37].mxu0  ;;  %v2079_v20 = vadd.f32 %v4051_v13, %v3704_v16 }
 0x883   : > { %v2071_v42 = vadd.f32 %v3704_v16, %v2070_v41  ;;  %v4052_v45 = vpop.f32.mrb[38].mxu0 }
 0x884   : > { %v2073_v19 = vpop.f32.mrb[39].mxu0  ;;  %v2082_v26 = vadd.f32 %v4052_v45, %v3704_v16  ;;  %v2103_v30 = vsel %vm579_vm1, %v2079_v20, -inf }
 0x885   : > { %v2074_v21 = vadd.f32 %v3704_v16, %v2073_v19  ;;  %v2097_v22 = vsel %vm579_vm1, %v2071_v42, -inf }
 0x886   : > { %2095 = vmax.xlane.f32.xlu0 %v2094_v48  ;;  %2098 = vmax.xlane.f32.xlu1 %v2097_v22  ;;  %v2106_v31 = vsel %vm579_vm1, %v2082_v26, -inf }
 0x887   : > { %v2100_v27 = vsel %vm579_vm1, %v2074_v21, -inf }
 0x88a   : > { %2101 = vmax.xlane.f32.xlu0 %v2100_v27  ;;  %2104 = vmax.xlane.f32.xlu1 %v2103_v30 }
 0x88e   : > { %2107 = vmax.xlane.f32.xlu0 %v2106_v31 }
 0x90b   : > { %v2087_v32 = vpop.xlane.xlu0 %2086 }
 0x90c   : > { %v2109_v33 = vsub.f32 %v2055_v7, %v2087_v32  ;;  %v2173_v7 = vld [vmem:[%s5566_s9] sm:$0xf] }
 0x90d   : > { %v2090_v36 = vpop.xlane.xlu1 %2089  ;;  %4176 = vmatprep.subr.msk.bf16.mxu1 %vm592_vm0, %v2173_v7  ;;  %v2198_v8 = vsel %vm592_vm0, %v2173_v7, 0 }
 0x90e   : > { %v2117_v62 = vmul.f32 1.442695, %v2109_v33  ;;  %v2110_v24 = vsub.f32 %v2058_v2, %v2090_v36  ;;  %4054 = vmatpush3.bf16.msra.mxu1 %v2198_v8 }
 0x90f   : > { %v2093_v0 = vpop.xlane.xlu0 %2092 }
 0x910   : > { %4479 = vpow2.f32 %v2117_v62  ;;  %v2119_v40 = vmul.f32 1.442695, %v2110_v24  ;;  %v2111_v1 = vsub.f32 %v2063_v61, %v2093_v0 }
 0x912   : > { %4481 = vpow2.f32 %v2119_v40  ;;  %v2121_v43 = vmul.f32 1.442695, %v2111_v1 }
 0x913   : > { %v2096_v44 = vpop.xlane.xlu0 %2095  ;;  %v2099_v46 = vpop.xlane.xlu1 %2098 }
 0x914   : > { %4483 = vpow2.f32 %v2121_v43  ;;  %v2112_v47 = vsub.f32 %v2066_v12, %v2096_v44  ;;  %v2113_v49 = vsub.f32 %v2071_v42, %v2099_v46  ;;  %v4453_v43 = vld [vmem:[%s5568_s11] sm:$0xff]   ;;  %v4454_v44 = vld [vmem:[%s5568_s11 + $0x8] sm:$0xff]   ;;  %v4455_v46 = vld [vmem:[%s5568_s11 + $0x10] sm:$0xff]  }
 0x915   : > { %4063 = vmatprep.subr.bf16.mxu0 %v4453_v43 }
 0x916   : > { %v2123_v50 = vmul.f32 1.442695, %v2112_v47  ;;  %v2125_v39 = vmul.f32 1.442695, %v2113_v49  ;;  %4064 = vmatpush3.bf16.msra.mxu0 %v4453_v43  ;;  %v4456_v47 = vld [vmem:[%s5568_s11 + $0x18] sm:$0xff]  }
 0x917   : > { %v2102_v53 = vpop.xlane.xlu0 %2101  ;;  %v2105_v54 = vpop.xlane.xlu1 %2104  ;;  %4065 = vmatprep.subr.bf16.mxu0 %v4454_v44  ;;  %v3711_v49 = vld [vmem:[%s5567_s10] ss:$0 sm:$0xff] }
 0x918   : > { %4485 = vpow2.f32 %v2123_v50  ;;  %v2114_v15 = vsub.f32 %v2074_v21, %v2102_v53  ;;  %v2115_v55 = vsub.f32 %v2079_v20, %v2105_v54 }
 0x919   : > { %4487 = vpow2.f32 %v2125_v39 }
 0x91a   : > { %v4480_v52 = vpop.eup %4479  ;;  %v2127_v56 = vmul.f32 1.442695, %v2114_v15  ;;  %v2129_v58 = vmul.f32 1.442695, %v2115_v55  ;;  %4066 = vmatpush3.bf16.msra.mxu0 %v4454_v44  ;;  %v4457_v55 = vld [vmem:[%s5568_s11 + $0x20] sm:$0xff]  }
 0x91b   : > { %v2108_v60 = vpop.xlane.xlu0 %2107  ;;  %v2133_v34 = vsel %vm579_vm1, %v4480_v52, 0.0  ;;  %4067 = vmatprep.subr.bf16.mxu0 %v4455_v46 }
 0x91c   : > { %v4482_v17 = vpop.eup %4481  ;;  %4489 = vpow2.f32 %v2127_v56  ;;  %v2116_v63 = vsub.f32 %v2082_v26, %v2108_v60  ;;  %2134 = vadd.xlane.f32.xlu1 %v2133_v34 }
 0x91d   : > { %4491 = vpow2.f32 %v2129_v58  ;;  %v2136_v25 = vsel %vm579_vm1, %v4482_v17, 0.0 }
 0x91e   : > { %v4484_v29 = vpop.eup %4483  ;;  %v2131_v35 = vmul.f32 1.442695, %v2116_v63  ;;  %2137 = vadd.xlane.f32.xlu0 %v2136_v25  ;;  %4068 = vmatpush3.bf16.msra.mxu0 %v4455_v46 }
 0x91f   : > { %v2139_v37 = vsel %vm579_vm1, %v4484_v29, 0.0  ;;  %4069 = vmatprep.subr.bf16.mxu0 %v4456_v47 }
 0x920   : > { %4493 = vpow2.f32 %v2131_v35  ;;  %2140 = vadd.xlane.f32.xlu1 %v2139_v37 }
 0x922   : > { %v4486_v38 = vpop.eup %4485  ;;  %4070 = vmatpush3.bf16.msra.mxu0 %v4456_v47 }
 0x923   : > { %v4488_v18 = vpop.eup %4487  ;;  %v2142_v3 = vsel %vm579_vm1, %v4486_v38, 0.0  ;;  %4071 = vmatprep.subr.bf16.mxu0 %v4457_v55 }
 0x924   : > { %2143 = vadd.xlane.f32.xlu0 %v2142_v3  ;;  %v2145_v4 = vsel %vm579_vm1, %v4488_v18, 0.0 }
 0x925   : > { %2146 = vadd.xlane.f32.xlu1 %v2145_v4 }
 0x926   : > { %v4490_v28 = vpop.eup %4489  ;;  %4072 = vmatpush3.bf16.msra.mxu0 %v4457_v55 }
 0x927   : > { %v4492_v6 = vpop.eup %4491  ;;  %v2148_v5 = vsel %vm579_vm1, %v4490_v28, 0.0 }
 0x928   : > { %2149 = vadd.xlane.f32.xlu0 %v2148_v5  ;;  %v2151_v16 = vsel %vm579_vm1, %v4492_v6, 0.0 }
 0x929   : > { %2152 = vadd.xlane.f32.xlu1 %v2151_v16 }
 0x92a   : > { %v4494_v57 = vpop.eup %4493 }
 0x92b   : > { %v2154_v59 = vsel %vm579_vm1, %v4494_v57, 0.0 }
 0x92c   : > { %2155 = vadd.xlane.f32.xlu0 %v2154_v59 }
 0x9a9   : > { %v2135_v9 = vpop.xlane.xlu1 %2134 }
 0x9aa   : > { %4495 = vrcp.f32 %v2135_v9 }
 0x9ab   : > { %v2138_v61 = vpop.xlane.xlu0 %2137 }
 0x9ac   : > { %4497 = vrcp.f32 %v2138_v61 }
 0x9ad   : > { %v2141_v2 = vpop.xlane.xlu1 %2140 }
 0x9ae   : > { %4499 = vrcp.f32 %v2141_v2 }
 0x9b1   : > { %v2144_v10 = vpop.xlane.xlu0 %2143 }
 0x9b2   : > { %4501 = vrcp.f32 %v2144_v10  ;;  %v2147_v11 = vpop.xlane.xlu1 %2146 }
 0x9b3   : > { %4503 = vrcp.f32 %v2147_v11 }
 0x9b4   : > { %v4496_v12 = vpop.eup %4495 }
 0x9b5   : > { %v2150_v13 = vpop.xlane.xlu0 %2149  ;;  %v2165_v42 = vmul.f32 %v4496_v12, %v4480_v52 }
 0x9b6   : > { %v4498_v14 = vpop.eup %4497  ;;  %4505 = vrcp.f32 %v2150_v13  ;;  %v2153_v41 = vpop.xlane.xlu1 %2152 }
 0x9b7   : > { %v2166_v45 = vmul.f32 %v4498_v14, %v4482_v17  ;;  %4507 = vrcp.f32 %v2153_v41 }
 0x9b8   : > { %v4500_v21 = vpop.eup %4499 }
 0x9b9   : > { %v2156_v19 = vpop.xlane.xlu0 %2155  ;;  %v2174_v20 = vpack.c.bf16 %v2166_v45, %v2165_v42  ;;  %v2167_v22 = vmul.f32 %v4500_v21, %v4484_v29  ;;  %v4458_v29 = vld [vmem:[%s5568_s11 + $0x28] sm:$0xff]   ;;  %v4459_v45 = vld [vmem:[%s5570_s13] sm:$0xff]  }
 0x9ba   : > { %4509 = vrcp.f32 %v2156_v19  ;;  %4073 = vmatprep.subr.bf16.mxu0 %v4458_v29  ;;  %4083 = vmatprep.subr.bf16.mxu1 %v4459_v45 }
 0x9bb   : > { %4055 = vmatprep.mubr.msk.bf16.mxu1 %vm579_vm1, %v2174_v20  ;;  %4074 = vmatpush3.bf16.msra.mxu0 %v4458_v29 }
 0x9bc   : > { %v4502_v48 = vpop.eup %4501 }
 0x9bd   : > { %v2168_v26 = vmul.f32 %v4502_v48, %v4486_v38  ;;  %v4504_v27 = vpop.eup %4503 }
 0x9be   : > { %v2169_v32 = vmul.f32 %v4504_v27, %v4488_v18 }
 0x9bf   : > { %v2175_v30 = vpack.c.bf16 %v2168_v26, %v2167_v22 }
 0x9c0   : > { %v4506_v31 = vpop.eup %4505 }
 0x9c1   : > { %4056 = vmatmul.mubr.msk.bf16.vlgmr.msra.gmra.mrb[24].mxu1 %vm579_vm1, %v2175_v30  ;;  %v2170_v33 = vmul.f32 %v4506_v31, %v4490_v28  ;;  %v4508_v36 = vpop.eup %4507 }
 0x9c2   : > { %v2171_v0 = vmul.f32 %v4508_v36, %v4492_v6  ;;  %4084 = vmatpush3.bf16.msra.mxu1 %v4459_v45 }
 0x9c3   : > { %v2176_v62 = vpack.c.bf16 %v2170_v33, %v2169_v32 }
 0x9c4   : > { %v4510_v24 = vpop.eup %4509 }
 0x9c5   : > { %4059 = vmatprep.mubr.msk.bf16.mxu1 %vm579_vm1, %v2176_v62  ;;  %v2172_v40 = vmul.f32 %v4510_v24, %v4494_v57 }
 0x9c7   : > { %v2177_v1 = vpack.c.bf16 %v2172_v40, %v2171_v0 }
 0x9c9   : > { %4060 = vmatmul.mubr.msk.bf16.gmra.mrb[28].mxu1 %vm579_vm1, %v2177_v1 }
 0xa94   : > { %v4057_v50 = vpop.f32.mrb[24].mxu1 }
 0xa95   : > { %v2234_v39 = vpop.f32.mrb[25].mxu1  ;;  %v5126_v53 = vadd.f32 %v4057_v50, %v3711_v49 }
 0xa96   : > { %v5128_v54 = vadd.f32 %v3711_v49, %v2234_v39  ;;  %v4058_v15 = vpop.f32.mrb[26].mxu1 }
 0xa97   : > { %v5133_v52 = vadd.f32 %v4058_v15, %v3711_v49  ;;  %v2237_v56 = vpop.f32.mrb[27].mxu1  ;;  %v2291_v34 = vrot.slane %v5126_v53, 1  ;;  %v2267_v44 = vrot.slane %v5126_v53, 7 }
 0xa98   : > { %v5135_v58 = vadd.f32 %v3711_v49, %v2237_v56  ;;  %v2289_v17 = vrot.slane %v5128_v54, 1  ;;  %v2265_v26 = vrot.slane %v5128_v54, 7 }
 0xa99   : > { %v4307_v60 = vpack.i.bf16 %v5133_v52, %v5126_v53  ;;  %v2292_v18 = vrot.slane %v5133_v52, 1  ;;  %v2268_v36 = vrot.slane %v5133_v52, 7 }
 0xa9a   : > { %v2290_v63 = vrot.slane %v5135_v58, 1  ;;  %v4312_v25 = vpack.i.bf16 %v5135_v58, %v5128_v54  ;;  %v2266_v30 = vrot.slane %v5135_v58, 7 }
 0xa9b   : > { %4308 = vrot.lane.b32.xlu0 %v4307_v60, %s4519_s21  ;;  %v2301_v9 = vsel %vm726_vm2, %v2291_v34, %v2292_v18 }
 0xa9c   : > { %4313 = vrot.lane.b32.xlu1 %v4312_v25, %s4519_s21  ;;  %v4061_v35 = vpop.f32.mrb[28].mxu1  ;;  %v2302_v37 = vsel %vm726_vm2, %v2290_v63, %v2291_v34  ;;  %v2303_v38 = vsel %vm726_vm2, %v2289_v17, %v2290_v63  ;;  %v2279_v0 = vsel %vm677_vm4, %v2265_v26, %v2266_v30  ;;  %v2278_v63 = vsel %vm677_vm4, %v2266_v30, %v2267_v44 }
 0xa9d   : > { %v2250_v3 = vpop.f32.mrb[29].mxu1  ;;  %v4317_v4 = vpack.i.bf16 %v2302_v37, %v2303_v38  ;;  %v5154_v28 = vadd.f32 %v4061_v35, %v3711_v49 }
 0xa9e   : > { %v5156_v6 = vadd.f32 %v3711_v49, %v2250_v3  ;;  %v4062_v5 = vpop.f32.mrb[30].mxu1 }
 0xa9f   : > { %v5158_v16 = vadd.f32 %v4062_v5, %v3711_v49  ;;  %v2253_v57 = vpop.f32.mrb[31].mxu1  ;;  %v2295_v61 = vrot.slane %v5154_v28, 1  ;;  %v2271_v45 = vrot.slane %v5154_v28, 7 }
 0xaa0   : > { %v2293_v59 = vrot.slane %v5156_v6, 1  ;;  %v5161_v7 = vadd.f32 %v3711_v49, %v2253_v57  ;;  %4318 = vrot.lane.b32.xlu1 %v4317_v4, %s4520_s22  ;;  %v2269_v34 = vrot.slane %v5156_v6, 7 }
 0xaa1   : > { %v2296_v8 = vrot.slane %v5158_v16, 1  ;;  %v4332_v19 = vpack.i.bf16 %v5158_v16, %v5154_v28  ;;  %v2272_v22 = vrot.slane %v5158_v16, 7 }
 0xaa2   : > { %v2294_v2 = vrot.slane %v5161_v7, 1  ;;  %v4322_v10 = vpack.i.bf16 %v5161_v7, %v5156_v6  ;;  %v2300_v11 = vsel %vm726_vm2, %v2292_v18, %v2293_v59  ;;  %v2270_v55 = vrot.slane %v5161_v7, 7 }
 0xaa3   : > { %v4327_v12 = vpack.i.bf16 %v2300_v11, %v2301_v9  ;;  %v2304_v42 = vsel %vm726_vm2, %v2296_v8, %v2289_v17  ;;  %v2297_v20 = vsel %vm726_vm2, %v2295_v61, %v2296_v8  ;;  %v2280_v31 = vsel %vm677_vm4, %v2272_v22, %v2265_v26 }
 0xaa4   : > { %4323 = vrot.lane.b32.xlu0 %v4322_v10, %s4519_s21  ;;  %v2298_v13 = vsel %vm726_vm2, %v2294_v2, %v2295_v61  ;;  %v2299_v14 = vsel %vm726_vm2, %v2293_v59, %v2294_v2  ;;  %v2312_v21 = vsel %vm717_vm3, %v2304_v42, 0.0  ;;  %v2281_v40 = vsel %vm661_vm5, %v2280_v31, 0.0 }
 0xaa5   : > { %4328 = vrot.lane.b32.xlu1 %v4327_v12, %s4520_s22  ;;  %v4337_v41 = vpack.i.bf16 %v2298_v13, %v2299_v14  ;;  %v4342_v48 = vpack.i.bf16 %v2312_v21, %v2297_v20  ;;  %v2277_v17 = vsel %vm677_vm4, %v2267_v44, %v2268_v36  ;;  %v2275_v4 = vsel %vm677_vm4, %v2269_v34, %v2270_v55 }
 0xaa6   : > { %v2276_v8 = vsel %vm677_vm4, %v2268_v36, %v2269_v34  ;;  %v2273_v21 = vsel %vm677_vm4, %v2271_v45, %v2272_v22  ;;  %v4460_v22 = vld [vmem:[%s5570_s13 + $0x8] sm:$0xff]  }
 0xaa7   : > { %4085 = vmatprep.subr.bf16.mxu1 %v4460_v22 }
 0xaa8   : > { %4338 = vrot.lane.b32.xlu0 %v4337_v41, %s4520_s22  ;;  %4086 = vmatpush3.bf16.msra.mxu1 %v4460_v22 }
 0xaa9   : > { %4333 = vrot.lane.b32.xlu1 %v4332_v19, %s4519_s21 }
 0xaad   : > { %4343 = vrot.lane.b32.xlu1 %v4342_v48, %s4520_s22  ;;  %v2274_v48 = vsel %vm677_vm4, %v2270_v55, %v2271_v45 }
 0xb0d   : > { %v4309_v62 = vpop.permute.xlu0 %4308 }
 0xb0e   : > { %v4314_v27 = vpop.permute.xlu1 %4313  ;;  %v4311_v49 = vunpack.i.h.bf16 %v4309_v62  ;;  %v4310_v50 = vunpack.i.l.bf16 %v4309_v62  ;;  %v3716_v62 = vld [vmem:[%s5569_s12] ss:$0 sm:$0xff] }
 0xb0f   : > { %v4316_v32 = vunpack.i.h.bf16 %v4314_v27  ;;  %v4315_v33 = vunpack.i.l.bf16 %v4314_v27 }
 0xb10   : > { %v2379_v18 = vsel %vm823_vm6, %v2278_v63, %v4310_v50  ;;  %v2380_v3 = vsel %vm823_vm6, %v2277_v17, %v4311_v49 }
 0xb11   : > { %v2378_v46 = vsel %vm823_vm6, %v2279_v0, %v4316_v32  ;;  %v2377_v47 = vsel %vm823_vm6, %v2281_v40, %v4315_v33 }
 0xb12   : > { %v4319_v24 = vpop.permute.xlu1 %4318 }
 0xb13   : > { %v4321_v1 = vunpack.i.h.bf16 %v4319_v24  ;;  %v4320_v43 = vunpack.i.l.bf16 %v4319_v24 }
 0xb15   : > { %v2385_v39 = vsel %vm832_vm7, %v2377_v47, %v4320_v43  ;;  %v2386_v15 = vsel %vm832_vm7, %v2378_v46, %v4321_v1 }
 0xb16   : > { %v2405_v56 = vpack.c.bf16 %v2386_v15, %v2385_v39  ;;  %v4324_v60 = vpop.permute.xlu0 %4323 }
 0xb17   : > { %v4329_v25 = vpop.permute.xlu1 %4328  ;;  %v4326_v29 = vunpack.i.h.bf16 %v4324_v60  ;;  %v4325_v35 = vunpack.i.l.bf16 %v4324_v60 }
 0xb18   : > { %v4331_v37 = vunpack.i.h.bf16 %v4329_v25  ;;  %v4330_v38 = vunpack.i.l.bf16 %v4329_v25  ;;  %4075 = vmatprep.mubr.msk.bf16.mxu0 %vm900_vm8, %v2405_v56 }
 0xb19   : > { %v2381_v11 = vsel %vm823_vm6, %v2276_v8, %v4325_v35  ;;  %v2382_v12 = vsel %vm823_vm6, %v2275_v4, %v4326_v29  ;;  %v4462_v8 = vld [vmem:[%s5568_s11 + $0x38] sm:$0xff]  }
 0xb1a   : > { %v2388_v5 = vsel %vm832_vm7, %v2380_v3, %v4331_v37  ;;  %v2387_v57 = vsel %vm832_vm7, %v2379_v18, %v4330_v38  ;;  %v4339_v59 = vpop.permute.xlu0 %4338 }
 0xb1b   : > { %v2406_v9 = vpack.c.bf16 %v2388_v5, %v2387_v57  ;;  %v4341_v61 = vunpack.i.h.bf16 %v4339_v59  ;;  %v4340_v2 = vunpack.i.l.bf16 %v4339_v59  ;;  %v4334_v10 = vpop.permute.xlu1 %4333  ;;  %v4461_v59 = vld [vmem:[%s5568_s11 + $0x30] sm:$0xff]  }
 0xb1c   : > { %v4336_v41 = vunpack.i.h.bf16 %v4334_v10  ;;  %v4335_v42 = vunpack.i.l.bf16 %v4334_v10  ;;  %4095 = vmatprep.subr.bf16.mxu1 %v4461_v59 }
 0xb1d   : > { %v2389_v13 = vsel %vm832_vm7, %v2381_v11, %v4340_v2  ;;  %v2390_v14 = vsel %vm832_vm7, %v2382_v12, %v4341_v61  ;;  %4076 = vmatmul.mubr.msk.bf16.vlgmr.msra.gmra.mrb[40].mxu0 %vm900_vm8, %v2406_v9  ;;  %v4463_v9 = vld [vmem:[%s5568_s11 + $0x40] sm:$0xff]   ;;  %v4464_v61 = vld [vmem:[%s5568_s11 + $0x48] sm:$0xff]  }
 0xb1e   : > { %v2407_v19 = vpack.c.bf16 %v2390_v14, %v2389_v13  ;;  %v2384_v30 = vsel %vm823_vm6, %v2273_v21, %v4336_v41  ;;  %v2383_v31 = vsel %vm823_vm6, %v2274_v48, %v4335_v42  ;;  %v3733_v11 = vld [vmem:[%s5571_s14] ss:$0 sm:$0xff] }
 0xb1f   : > { %v4344_v20 = vpop.permute.xlu1 %4343 }
 0xb20   : > { %v4346_v26 = vunpack.i.h.bf16 %v4344_v20  ;;  %v4345_v27 = vunpack.i.l.bf16 %v4344_v20  ;;  %4079 = vmatprep.mubr.msk.bf16.mxu0 %vm900_vm8, %v2407_v19 }
 0xb22   : > { %v2391_v32 = vsel %vm832_vm7, %v2383_v31, %v4345_v27  ;;  %v2392_v33 = vsel %vm832_vm7, %v2384_v30, %v4346_v26  ;;  %v4466_v31 = vld [vmem:[%s5568_s11 + $0x58] sm:$0xff]  }
 0xb23   : > { %v2408_v36 = vpack.c.bf16 %v2392_v33, %v2391_v32 }
 0xb25   : > { %4080 = vmatmul.mubr.msk.bf16.gmra.mrb[44].mxu0 %vm900_vm8, %v2408_v36 }
 0xbf0   : > { %v4077_v24 = vpop.f32.mrb[40].mxu0 }
 0xbf1   : > { %v2507_v0 = vadd.f32 %v4077_v24, %v3716_v62  ;;  %v2498_v40 = vpop.f32.mrb[41].mxu0 }
 0xbf2   : > { %v2499_v1 = vadd.f32 %v3716_v62, %v2498_v40  ;;  %v4078_v43 = vpop.f32.mrb[42].mxu0 }
 0xbf3   : > { %v2510_v44 = vadd.f32 %v4078_v43, %v3716_v62  ;;  %v2501_v46 = vpop.f32.mrb[43].mxu0  ;;  %v2531_v49 = vmax.f32 %v2507_v0, 0.0 }
 0xbf4   : > { %v2502_v47 = vadd.f32 %v3716_v62, %v2501_v46  ;;  %v2529_v39 = vmax.f32 %v2499_v1, 0.0 }
 0xbf5   : > { %v2532_v50 = vmax.f32 %v2510_v44, 0.0 }
 0xbf6   : > { %v2530_v15 = vmax.f32 %v2502_v47, 0.0 }
 0xbf7   : > { %v2542_v55 = vpack.c.bf16 %v2532_v50, %v2531_v49 }
 0xbf8   : > { %v2541_v56 = vpack.c.bf16 %v2530_v15, %v2529_v39  ;;  %v4081_v60 = vpop.f32.mrb[44].mxu0 }
 0xbf9   : > { %v2523_v34 = vadd.f32 %v4081_v60, %v3716_v62  ;;  %v2514_v17 = vpop.f32.mrb[45].mxu0 }
 0xbfa   : > { %v2515_v63 = vadd.f32 %v3716_v62, %v2514_v17  ;;  %v4082_v25 = vpop.f32.mrb[46].mxu0  ;;  %4087 = vmatprep.mubr.msk.bf16.mxu1 %vm823_vm6, %v2541_v56 }
 0xbfb   : > { %v2526_v29 = vadd.f32 %v4082_v25, %v3716_v62  ;;  %v2517_v35 = vpop.f32.mrb[47].mxu0  ;;  %4088 = vmatmul.mubr.msk.bf16.vlgmr.msra.gmra.mrb[32].mxu1 %vm823_vm6, %v2542_v55  ;;  %v2535_v38 = vmax.f32 %v2523_v34, 0.0  ;;  %v4467_v25 = vld [vmem:[%s5570_s13 + $0x10] sm:$0xff]  }
 0xbfc   : > { %v2518_v37 = vadd.f32 %v3716_v62, %v2517_v35  ;;  %v2533_v3 = vmax.f32 %v2515_v63, 0.0  ;;  %4096 = vmatpush3.bf16.msra.mxu1 %v4461_v59  ;;  %4115 = vmatprep.subr.bf16.mxu0 %v4467_v25 }
 0xbfd   : > { %v2536_v18 = vmax.f32 %v2526_v29, 0.0  ;;  %4097 = vmatprep.subr.bf16.mxu1 %v4462_v8  ;;  %4116 = vmatpush3.bf16.msra.mxu0 %v4467_v25 }
 0xbfe   : > { %v2534_v4 = vmax.f32 %v2518_v37, 0.0 }
 0xbff   : > { %v2544_v5 = vpack.c.bf16 %v2536_v18, %v2535_v38 }
 0xc00   : > { %v2543_v57 = vpack.c.bf16 %v2534_v4, %v2533_v3  ;;  %4098 = vmatpush3.bf16.msra.mxu1 %v4462_v8 }
 0xc01   : > { %4099 = vmatprep.subr.bf16.mxu1 %v4463_v9 }
 0xc02   : > { %4091 = vmatprep.mubr.msk.bf16.mxu1 %vm823_vm6, %v2543_v57 }
 0xc03   : > { %4092 = vmatmul.mubr.msk.bf16.gmra.mrb[36].mxu1 %vm823_vm6, %v2544_v5 }
 0xc04   : > { %4100 = vmatpush3.bf16.msra.mxu1 %v4463_v9 }
 0xc05   : > { %4101 = vmatprep.subr.bf16.mxu1 %v4464_v61 }
 0xc08   : > { %4102 = vmatpush3.bf16.msra.mxu1 %v4464_v61 }
 0xcce   : > { %v4089_v2 = vpop.f32.mrb[32].mxu1 }
 0xccf   : > { %v2636_v10 = vadd.f32 %v4089_v2, %v5126_v53  ;;  %v2603_v12 = vpop.f32.mrb[33].mxu1  ;;  %v4465_v53 = vld [vmem:[%s5568_s11 + $0x50] sm:$0xff]  }
 0xcd0   : > { %v2634_v13 = vadd.f32 %v2603_v12, %v5128_v54  ;;  %v4090_v14 = vpop.f32.mrb[34].mxu1  ;;  %4103 = vmatprep.subr.bf16.mxu1 %v4465_v53 }
 0xcd1   : > { %v2637_v41 = vadd.f32 %v4090_v14, %v5133_v52  ;;  %v2606_v42 = vpop.f32.mrb[35].mxu1  ;;  %v5267_v45 = vadd.f32 %v3733_v11, %v2636_v10  ;;  %4104 = vmatpush3.bf16.msra.mxu1 %v4465_v53 }
 0xcd2   : > { %v5269_v19 = vadd.f32 %v3733_v11, %v2634_v13  ;;  %v2635_v20 = vadd.f32 %v2606_v42, %v5135_v58  ;;  %4105 = vmatprep.subr.bf16.mxu1 %v4466_v31 }
 0xcd3   : > { %v5275_v21 = vadd.f32 %v3733_v11, %v2637_v41  ;;  %v2683_v30 = vrot.slane %v5267_v45, 2  ;;  %v2659_v14 = vrot.slane %v5267_v45, 6 }
 0xcd4   : > { %v5277_v48 = vadd.f32 %v3733_v11, %v2635_v20  ;;  %v2681_v27 = vrot.slane %v5269_v19, 2  ;;  %v2657_v3 = vrot.slane %v5269_v19, 6 }
 0xcd5   : > { %v4347_v54 = vpack.i.bf16 %v5275_v21, %v5267_v45  ;;  %4106 = vmatpush3.bf16.msra.mxu1 %v4466_v31  ;;  %v2660_v9 = vrot.slane %v5275_v21, 6 }
 0xcd6   : > { %v4093_v52 = vpop.f32.mrb[36].mxu1  ;;  %v4352_v26 = vpack.i.bf16 %v5277_v48, %v5269_v19  ;;  %v2682_v58 = vrot.slane %v5277_v48, 2  ;;  %v2658_v5 = vrot.slane %v5277_v48, 6 }
 0xcd7   : > { %v2640_v32 = vadd.f32 %v4093_v52, %v5154_v28  ;;  %4348 = vrot.lane.b32.xlu1 %v4347_v54, %s4519_s21  ;;  %v2619_v33 = vpop.f32.mrb[37].mxu1  ;;  %v2684_v28 = vrot.slane %v5275_v21, 2  ;;  %v2669_v31 = vsel %vm1122_vm11, %v2659_v14, %v2660_v9 }
 0xcd8   : > { %v2638_v36 = vadd.f32 %v2619_v33, %v5156_v6  ;;  %4353 = vrot.lane.b32.xlu0 %v4352_v26, %s4519_s21  ;;  %v4094_v22 = vpop.f32.mrb[38].mxu1  ;;  %v2694_v62 = vsel %vm1171_vm9, %v2682_v58, %v2683_v30  ;;  %v2695_v24 = vsel %vm1171_vm9, %v2681_v27, %v2682_v58  ;;  %v2671_v10 = vsel %vm1122_vm11, %v2657_v3, %v2658_v5 }
 0xcd9   : > { %v2641_v0 = vadd.f32 %v4094_v22, %v5158_v16  ;;  %v2622_v40 = vpop.f32.mrb[39].mxu1  ;;  %v4357_v1 = vpack.i.bf16 %v2694_v62, %v2695_v24  ;;  %v5299_v43 = vadd.f32 %v3733_v11, %v2640_v32  ;;  %v2693_v49 = vsel %vm1171_vm9, %v2683_v30, %v2684_v28 }
 0xcda   : > { %v5301_v44 = vadd.f32 %v3733_v11, %v2638_v36  ;;  %v2639_v6 = vadd.f32 %v2622_v40, %v5161_v7  ;;  %v2670_v32 = vsel %vm1122_vm11, %v2658_v5, %v2659_v14 }
 0xcdb   : > { %v5304_v46 = vadd.f32 %v3733_v11, %v2641_v0  ;;  %v2687_v55 = vrot.slane %v5299_v43, 2  ;;  %v2663_v25 = vrot.slane %v5299_v43, 6 }
 0xcdc   : > { %v5306_v47 = vadd.f32 %v3733_v11, %v2639_v6  ;;  %4358 = vrot.lane.b32.xlu0 %v4357_v1, %s4520_s22  ;;  %v2685_v16 = vrot.slane %v5301_v44, 2  ;;  %v2661_v26 = vrot.slane %v5301_v44, 6 }
 0xcdd   : > { %v2688_v50 = vrot.slane %v5304_v46, 2  ;;  %v4372_v29 = vpack.i.bf16 %v5304_v46, %v5299_v43  ;;  %v2664_v18 = vrot.slane %v5304_v46, 6 }
 0xcde   : > { %v4362_v39 = vpack.i.bf16 %v5306_v47, %v5301_v44  ;;  %v2692_v7 = vsel %vm1171_vm9, %v2684_v28, %v2685_v16  ;;  %v2686_v15 = vrot.slane %v5306_v47, 2  ;;  %v2662_v30 = vrot.slane %v5306_v47, 6 }
 0xcdf   : > { %v4367_v56 = vpack.i.bf16 %v2692_v7, %v2693_v49  ;;  %v2696_v63 = vsel %vm1171_vm9, %v2688_v50, %v2681_v27  ;;  %v2689_v35 = vsel %vm1171_vm9, %v2687_v55, %v2688_v50  ;;  %v2672_v8 = vsel %vm1122_vm11, %v2664_v18, %v2657_v3 }
 0xce0   : > { %4363 = vrot.lane.b32.xlu0 %v4362_v39, %s4519_s21  ;;  %v2690_v60 = vsel %vm1171_vm9, %v2686_v15, %v2687_v55  ;;  %v2691_v34 = vsel %vm1171_vm9, %v2685_v16, %v2686_v15  ;;  %v2704_v37 = vsel %vm1162_vm10, %v2696_v63, 0.0  ;;  %v2673_v11 = vsel %vm1106_vm12, %v2672_v8, 0.0 }
 0xce1   : > { %4368 = vrot.lane.b32.xlu1 %v4367_v56, %s4520_s22  ;;  %v4377_v17 = vpack.i.bf16 %v2690_v60, %v2691_v34  ;;  %v4382_v38 = vpack.i.bf16 %v2704_v37, %v2689_v35  ;;  %v2668_v1 = vsel %vm1122_vm11, %v2660_v9, %v2661_v26  ;;  %v2667_v49 = vsel %vm1122_vm11, %v2661_v26, %v2662_v30 }
 0xce2   : > { %v2665_v37 = vsel %vm1122_vm11, %v2663_v25, %v2664_v18  ;;  %v4468_v18 = vld [vmem:[%s5570_s13 + $0x18] sm:$0xff]  }
 0xce3   : > { %4117 = vmatprep.subr.bf16.mxu0 %v4468_v18 }
 0xce4   : > { %4378 = vrot.lane.b32.xlu0 %v4377_v17, %s4520_s22  ;;  %4118 = vmatpush3.bf16.msra.mxu0 %v4468_v18 }
 0xce5   : > { %4373 = vrot.lane.b32.xlu1 %v4372_v29, %s4519_s21 }
 0xce9   : > { %4383 = vrot.lane.b32.xlu1 %v4382_v38, %s4520_s22  ;;  %v2666_v38 = vsel %vm1122_vm11, %v2662_v30, %v2663_v25 }
 0xd49   : > { %v4349_v61 = vpop.permute.xlu1 %4348 }
 0xd4a   : > { %v4354_v4 = vpop.permute.xlu0 %4353  ;;  %v4351_v20 = vunpack.i.h.bf16 %v4349_v61  ;;  %v4350_v53 = vunpack.i.l.bf16 %v4349_v61  ;;  %v3747_v61 = vld [vmem:[%s5569_s12 + $0x1] ss:$0 sm:$0xff] }
 0xd4b   : > { %v4356_v57 = vunpack.i.h.bf16 %v4354_v4  ;;  %v4355_v59 = vunpack.i.l.bf16 %v4354_v4 }
 0xd4c   : > { %v2771_v0 = vsel %vm823_vm6, %v2670_v32, %v4350_v53  ;;  %v2772_v40 = vsel %vm823_vm6, %v2669_v31, %v4351_v20 }
 0xd4d   : > { %v2769_v41 = vsel %vm823_vm6, %v2673_v11, %v4355_v59  ;;  %v2770_v42 = vsel %vm823_vm6, %v2671_v10, %v4356_v57 }
 0xd4e   : > { %v4359_v2 = vpop.permute.xlu0 %4358 }
 0xd4f   : > { %v4361_v12 = vunpack.i.h.bf16 %v4359_v2  ;;  %v4360_v13 = vunpack.i.l.bf16 %v4359_v2 }
 0xd51   : > { %v2777_v54 = vsel %vm832_vm7, %v2769_v41, %v4360_v13  ;;  %v2778_v52 = vsel %vm832_vm7, %v2770_v42, %v4361_v12 }
 0xd52   : > { %v2798_v27 = vpack.c.bf16 %v2778_v52, %v2777_v54  ;;  %v4364_v58 = vpop.permute.xlu0 %4363 }
 0xd53   : > { %v4369_v33 = vpop.permute.xlu1 %4368  ;;  %v4366_v36 = vunpack.i.h.bf16 %v4364_v58  ;;  %v4365_v22 = vunpack.i.l.bf16 %v4364_v58 }
 0xd54   : > { %v4371_v62 = vunpack.i.h.bf16 %v4369_v33  ;;  %v4370_v24 = vunpack.i.l.bf16 %v4369_v33  ;;  %4107 = vmatprep.mubr.msk.bf16.mxu1 %vm900_vm8, %v2798_v27 }
 0xd55   : > { %v2773_v55 = vsel %vm823_vm6, %v2668_v1, %v4365_v22  ;;  %v2774_v56 = vsel %vm823_vm6, %v2667_v49, %v4366_v36  ;;  %v4470_v49 = vld [vmem:[%s5568_s11 + $0x68] sm:$0xff]  }
 0xd56   : > { %v2780_v28 = vsel %vm832_vm7, %v2772_v40, %v4371_v62  ;;  %v2779_v6 = vsel %vm832_vm7, %v2771_v0, %v4370_v24  ;;  %v4379_v16 = vpop.permute.xlu0 %4378 }
 0xd57   : > { %v2799_v50 = vpack.c.bf16 %v2780_v28, %v2779_v6  ;;  %v4381_v39 = vunpack.i.h.bf16 %v4379_v16  ;;  %v4380_v7 = vunpack.i.l.bf16 %v4379_v16  ;;  %v4374_v15 = vpop.permute.xlu1 %4373  ;;  %v4469_v16 = vld [vmem:[%s5568_s11 + $0x60] sm:$0xff]  }
 0xd58   : > { %v4376_v17 = vunpack.i.h.bf16 %v4374_v15  ;;  %v4375_v63 = vunpack.i.l.bf16 %v4374_v15  ;;  %4127 = vmatprep.subr.bf16.mxu0 %v4469_v16 }
 0xd59   : > { %v2781_v60 = vsel %vm832_vm7, %v2773_v55, %v4380_v7  ;;  %v2782_v34 = vsel %vm832_vm7, %v2774_v56, %v4381_v39  ;;  %4108 = vmatmul.mubr.msk.bf16.vlgmr.msra.gmra.mrb[40].mxu1 %vm900_vm8, %v2799_v50  ;;  %v4471_v50 = vld [vmem:[%s5568_s11 + $0x70] sm:$0xff]   ;;  %v4472_v39 = vld [vmem:[%s5568_s11 + $0x78] sm:$0xff]   ;;  %v3769_v55 = vld [vmem:[%s5571_s14 + $0x1] ss:$0 sm:$0xff] }
 0xd5a   : > { %v2800_v29 = vpack.c.bf16 %v2782_v34, %v2781_v60  ;;  %v2775_v5 = vsel %vm823_vm6, %v2666_v38, %v4375_v63  ;;  %v2776_v57 = vsel %vm823_vm6, %v2665_v37, %v4376_v17 }
 0xd5b   : > { %v4384_v35 = vpop.permute.xlu1 %4383 }
 0xd5c   : > { %v4386_v3 = vunpack.i.h.bf16 %v4384_v35  ;;  %v4385_v4 = vunpack.i.l.bf16 %v4384_v35  ;;  %4111 = vmatprep.mubr.msk.bf16.mxu1 %vm900_vm8, %v2800_v29 }
 0xd5e   : > { %v2783_v59 = vsel %vm832_vm7, %v2775_v5, %v4385_v4  ;;  %v2784_v8 = vsel %vm832_vm7, %v2776_v57, %v4386_v3  ;;  %v4474_v57 = vld [vmem:[%s5568_s11 + $0x88] sm:$0xff]  }
 0xd5f   : > { %v2801_v9 = vpack.c.bf16 %v2784_v8, %v2783_v59 }
 0xd61   : > { %4112 = vmatmul.mubr.msk.bf16.gmra.mrb[44].mxu1 %vm900_vm8, %v2801_v9 }
 0xe2c   : > { %v4109_v2 = vpop.f32.mrb[40].mxu1 }
 0xe2d   : > { %v2901_v10 = vadd.f32 %v4109_v2, %v3747_v61  ;;  %v2892_v11 = vpop.f32.mrb[41].mxu1 }
 0xe2e   : > { %v2893_v12 = vadd.f32 %v3747_v61, %v2892_v11  ;;  %v4110_v13 = vpop.f32.mrb[42].mxu1 }
 0xe2f   : > { %v2904_v14 = vadd.f32 %v4110_v13, %v3747_v61  ;;  %v2895_v41 = vpop.f32.mrb[43].mxu1  ;;  %v2925_v20 = vmax.f32 %v2901_v10, 0.0 }
 0xe30   : > { %v2896_v42 = vadd.f32 %v3747_v61, %v2895_v41  ;;  %v2923_v54 = vmax.f32 %v2893_v12, 0.0 }
 0xe31   : > { %v2926_v53 = vmax.f32 %v2904_v14, 0.0 }
 0xe32   : > { %v2924_v52 = vmax.f32 %v2896_v42, 0.0 }
 0xe33   : > { %v2937_v26 = vpack.c.bf16 %v2926_v53, %v2925_v20 }
 0xe34   : > { %v2936_v27 = vpack.c.bf16 %v2924_v52, %v2923_v54  ;;  %v4113_v58 = vpop.f32.mrb[44].mxu1 }
 0xe35   : > { %v2917_v30 = vadd.f32 %v4113_v58, %v3747_v61  ;;  %v2908_v31 = vpop.f32.mrb[45].mxu1 }
 0xe36   : > { %v2909_v32 = vadd.f32 %v3747_v61, %v2908_v31  ;;  %v4114_v33 = vpop.f32.mrb[46].mxu1  ;;  %4119 = vmatprep.mubr.msk.bf16.mxu0 %vm823_vm6, %v2936_v27 }
 0xe37   : > { %v2920_v36 = vadd.f32 %v4114_v33, %v3747_v61  ;;  %v2911_v22 = vpop.f32.mrb[47].mxu1  ;;  %4120 = vmatmul.mubr.msk.bf16.vlgmr.msra.gmra.mrb[48].mxu0 %vm823_vm6, %v2937_v26  ;;  %v2929_v24 = vmax.f32 %v2917_v30, 0.0  ;;  %v4475_v33 = vld [vmem:[%s5570_s13 + $0x20] sm:$0xff]  }
 0xe38   : > { %v2912_v62 = vadd.f32 %v3747_v61, %v2911_v22  ;;  %v2927_v40 = vmax.f32 %v2909_v32, 0.0  ;;  %4128 = vmatpush3.bf16.msra.mxu0 %v4469_v16  ;;  %4171 = vmatprep.subr.bf16.mxu1 %v4475_v33 }
 0xe39   : > { %v2930_v0 = vmax.f32 %v2920_v36, 0.0  ;;  %4129 = vmatprep.subr.bf16.mxu0 %v4470_v49  ;;  %4173 = vmatpush3.bf16.msra.mxu1 %v4475_v33 }
 0xe3a   : > { %v2928_v1 = vmax.f32 %v2912_v62, 0.0 }
 0xe3b   : > { %v2939_v28 = vpack.c.bf16 %v2930_v0, %v2929_v24 }
 0xe3c   : > { %v2938_v6 = vpack.c.bf16 %v2928_v1, %v2927_v40  ;;  %4130 = vmatpush3.bf16.msra.mxu0 %v4470_v49 }
 0xe3d   : > { %4131 = vmatprep.subr.bf16.mxu0 %v4471_v50 }
 0xe3e   : > { %4123 = vmatprep.mubr.msk.bf16.mxu0 %vm823_vm6, %v2938_v6 }
 0xe3f   : > { %4124 = vmatmul.mubr.msk.bf16.gmra.mrb[52].mxu0 %vm823_vm6, %v2939_v28 }
 0xe40   : > { %4132 = vmatpush3.bf16.msra.mxu0 %v4471_v50 }
 0xe41   : > { %4133 = vmatprep.subr.bf16.mxu0 %v4472_v39 }
 0xe44   : > { %4134 = vmatpush3.bf16.msra.mxu0 %v4472_v39 }
 0xf0a   : > { %v4121_v7 = vpop.f32.mrb[48].mxu0 }
 0xf0b   : > { %v3031_v15 = vadd.f32 %v4121_v7, %v5267_v45  ;;  %v2998_v56 = vpop.f32.mrb[49].mxu0  ;;  %v4473_v45 = vld [vmem:[%s5568_s11 + $0x80] sm:$0xff]  }
 0xf0c   : > { %v3029_v60 = vadd.f32 %v2998_v56, %v5269_v19  ;;  %v4122_v34 = vpop.f32.mrb[50].mxu0  ;;  %4135 = vmatprep.subr.bf16.mxu0 %v4473_v45 }
 0xf0d   : > { %v3032_v17 = vadd.f32 %v4122_v34, %v5275_v21  ;;  %v3001_v63 = vpop.f32.mrb[51].mxu0  ;;  %v5413_v25 = vadd.f32 %v3769_v55, %v3031_v15  ;;  %4136 = vmatpush3.bf16.msra.mxu0 %v4473_v45 }
 0xf0e   : > { %v5415_v29 = vadd.f32 %v3769_v55, %v3029_v60  ;;  %v3030_v35 = vadd.f32 %v3001_v63, %v5277_v48  ;;  %4137 = vmatprep.subr.bf16.mxu0 %v4474_v57 }
 0xf0f   : > { %v5421_v37 = vadd.f32 %v3769_v55, %v3032_v17  ;;  %v3055_v21 = vrot.slane %v5413_v25, 4 }
 0xf10   : > { %v5423_v38 = vadd.f32 %v3769_v55, %v3030_v35  ;;  %v3053_v3 = vrot.slane %v5415_v29, 4 }
 0xf11   : > { %v4387_v19 = vpack.i.bf16 %v5421_v37, %v5413_v25  ;;  %v3056_v10 = vrot.slane %v5421_v37, 4  ;;  %4138 = vmatpush3.bf16.msra.mxu0 %v4474_v57 }
 0xf12   : > { %v3054_v4 = vrot.slane %v5423_v38, 4  ;;  %v4125_v48 = vpop.f32.mrb[52].mxu0  ;;  %v4392_v5 = vpack.i.bf16 %v5423_v38, %v5415_v29  ;;  %4147 = vmatprep.subr.bf16.mxu0 %v4475_v33 }
 0xf13   : > { %v3035_v59 = vadd.f32 %v4125_v48, %v5299_v43  ;;  %4388 = vrot.lane.b32.xlu1 %v4387_v19, %s4519_s21  ;;  %v3014_v8 = vpop.f32.mrb[53].mxu0 }
 0xf14   : > { %v3033_v9 = vadd.f32 %v3014_v8, %v5301_v44  ;;  %4393 = vrot.lane.b32.xlu0 %v4392_v5, %s4519_s21  ;;  %v4126_v18 = vpop.f32.mrb[54].mxu0  ;;  %v3066_v61 = vsel %vm1568_vm13, %v3054_v4, %v3055_v21  ;;  %v3067_v2 = vsel %vm1568_vm13, %v3053_v3, %v3054_v4 }
 0xf15   : > { %v3036_v11 = vadd.f32 %v4126_v18, %v5304_v46  ;;  %v3017_v43 = vpop.f32.mrb[55].mxu0  ;;  %v4397_v12 = vpack.i.bf16 %v3066_v61, %v3067_v2  ;;  %v5445_v13 = vadd.f32 %v3769_v55, %v3035_v59  ;;  %v3065_v46 = vsel %vm1568_vm13, %v3055_v21, %v3056_v10 }
 0xf16   : > { %v5447_v44 = vadd.f32 %v3769_v55, %v3033_v9  ;;  %v3034_v14 = vadd.f32 %v3017_v43, %v5306_v47 }
 0xf17   : > { %v5450_v41 = vadd.f32 %v3769_v55, %v3036_v11  ;;  %v3059_v54 = vrot.slane %v5445_v13, 4 }
 0xf18   : > { %v3057_v42 = vrot.slane %v5447_v44, 4  ;;  %v5453_v20 = vadd.f32 %v3769_v55, %v3034_v14  ;;  %4398 = vrot.lane.b32.xlu0 %v4397_v12, %s4520_s22 }
 0xf19   : > { %v3060_v53 = vrot.slane %v5450_v41, 4  ;;  %v4412_v36 = vpack.i.bf16 %v5450_v41, %v5445_v13 }
 0xf1a   : > { %v3058_v52 = vrot.slane %v5453_v20, 4  ;;  %v4402_v47 = vpack.i.bf16 %v5453_v20, %v5447_v44  ;;  %v3064_v26 = vsel %vm1568_vm13, %v3056_v10, %v3057_v42 }
 0xf1b   : > { %v4407_v27 = vpack.i.bf16 %v3064_v26, %v3065_v46  ;;  %v3068_v32 = vsel %vm1568_vm13, %v3060_v53, %v3053_v3  ;;  %v3061_v22 = vsel %vm1568_vm13, %v3059_v54, %v3060_v53 }
 0xf1c   : > { %4403 = vrot.lane.b32.xlu0 %v4402_v47, %s4519_s21  ;;  %v3062_v58 = vsel %vm1568_vm13, %v3058_v52, %v3059_v54  ;;  %v3063_v30 = vsel %vm1568_vm13, %v3057_v42, %v3058_v52  ;;  %v3084_v62 = vsel %vm1608_vm14, %v3068_v32, 0.0  ;;  %v3069_v16 = vsel %vm1552_vm15, %v3068_v32, 0.0 }
 0xf1d   : > { %4408 = vrot.lane.b32.xlu1 %v4407_v27, %s4520_s22  ;;  %v4417_v31 = vpack.i.bf16 %v3062_v58, %v3063_v30  ;;  %v4422_v24 = vpack.i.bf16 %v3084_v62, %v3061_v22  ;;  %v3783_v27 = vld [vmem:[%s5569_s12 + $0x2] ss:$0 sm:$0xff] }
 0xf20   : > { %4418 = vrot.lane.b32.xlu0 %v4417_v31, %s4520_s22 }
 0xf21   : > { %4413 = vrot.lane.b32.xlu1 %v4412_v36, %s4519_s21 }
 0xf25   : > { %4423 = vrot.lane.b32.xlu1 %v4422_v24, %s4520_s22 }
 0xf85   : > { %v4389_v28 = vpop.permute.xlu1 %4388 }
 0xf86   : > { %v4394_v0 = vpop.permute.xlu0 %4393  ;;  %v4391_v7 = vunpack.i.h.bf16 %v4389_v28  ;;  %v4390_v15 = vunpack.i.l.bf16 %v4389_v28 }
 0xf87   : > { %v4396_v40 = vunpack.i.h.bf16 %v4394_v0  ;;  %v4395_v1 = vunpack.i.l.bf16 %v4394_v0 }
 0xf88   : > { %v3151_v19 = vsel %vm823_vm6, %v3066_v61, %v4390_v15  ;;  %v3152_v21 = vsel %vm823_vm6, %v3065_v46, %v4391_v7 }
 0xf89   : > { %v3150_v39 = vsel %vm823_vm6, %v3067_v2, %v4396_v40  ;;  %v3149_v51 = vsel %vm823_vm6, %v3069_v16, %v4395_v1 }
 0xf8a   : > { %v4399_v6 = vpop.permute.xlu0 %4398 }
 0xf8b   : > { %v4401_v49 = vunpack.i.h.bf16 %v4399_v6  ;;  %v4400_v50 = vunpack.i.l.bf16 %v4399_v6 }
 0xf8d   : > { %v3157_v55 = vsel %vm832_vm7, %v3149_v51, %v4400_v50  ;;  %v3158_v56 = vsel %vm832_vm7, %v3150_v39, %v4401_v49 }
 0xf8e   : > { %v3178_v60 = vpack.c.bf16 %v3158_v56, %v3157_v55  ;;  %v4404_v34 = vpop.permute.xlu0 %4403 }
 0xf8f   : > { %v4409_v17 = vpop.permute.xlu1 %4408  ;;  %v4406_v63 = vunpack.i.h.bf16 %v4404_v34  ;;  %v4405_v35 = vunpack.i.l.bf16 %v4404_v34 }
 0xf90   : > { %v4411_v45 = vunpack.i.h.bf16 %v4409_v17  ;;  %v4410_v23 = vunpack.i.l.bf16 %v4409_v17  ;;  %4139 = vmatprep.mubr.msk.bf16.mxu0 %vm900_vm8, %v3178_v60 }
 0xf91   : > { %v3153_v9 = vsel %vm823_vm6, %v3064_v26, %v4405_v35  ;;  %v3154_v18 = vsel %vm823_vm6, %v3063_v30, %v4406_v63  ;;  %v4476_v26 = vld [vmem:[%s5570_s13 + $0x28] sm:$0xff]  }
 0xf92   : > { %v3160_v3 = vsel %vm832_vm7, %v3152_v21, %v4411_v45  ;;  %v3159_v4 = vsel %vm832_vm7, %v3151_v19, %v4410_v23  ;;  %v4419_v48 = vpop.permute.xlu0 %4418  ;;  %4172 = vmatprep.subr.bf16.mxu1 %v4476_v26  ;;  %v4477_v45 = vld [vmem:[%s5572_s15] sm:$0xff]   ;;  %v4478_v23 = vld [vmem:[%s5572_s15 + $0x8] sm:$0xff]  }
 0xf93   : > { %v3179_v5 = vpack.c.bf16 %v3160_v3, %v3159_v4  ;;  %v4421_v57 = vunpack.i.h.bf16 %v4419_v48  ;;  %v4420_v59 = vunpack.i.l.bf16 %v4419_v48  ;;  %v4414_v8 = vpop.permute.xlu1 %4413  ;;  %4174 = vmatpush3.bf16.msra.mxu1 %v4476_v26  ;;  %v3805_v4 = vld [vmem:[%s5571_s14 + $0x2] ss:$0 sm:$0xff] }
 0xf94   : > { %v4416_v61 = vunpack.i.h.bf16 %v4414_v8  ;;  %v4415_v11 = vunpack.i.l.bf16 %v4414_v8  ;;  %4159 = vmatprep.subr.bf16.mxu1 %v4477_v45 }
 0xf95   : > { %v3162_v2 = vsel %vm832_vm7, %v3154_v18, %v4421_v57  ;;  %v3161_v10 = vsel %vm832_vm7, %v3153_v9, %v4420_v59  ;;  %4140 = vmatmul.mubr.msk.bf16.vlgmr.msra.gmra.mrb[56].mxu0 %vm900_vm8, %v3179_v5 }
 0xf96   : > { %v3180_v43 = vpack.c.bf16 %v3162_v2, %v3161_v10  ;;  %4148 = vmatpush3.bf16.msra.mxu0 %v4475_v33  ;;  %v3155_v53 = vsel %vm823_vm6, %v3062_v58, %v4415_v11  ;;  %v3156_v46 = vsel %vm823_vm6, %v3061_v22, %v4416_v61 }
 0xf97   : > { %v4424_v12 = vpop.permute.xlu1 %4423  ;;  %4149 = vmatprep.subr.bf16.mxu0 %v4476_v26 }
 0xf98   : > { %v4426_v14 = vunpack.i.h.bf16 %v4424_v12  ;;  %v4425_v42 = vunpack.i.l.bf16 %v4424_v12  ;;  %4143 = vmatprep.mubr.msk.bf16.mxu0 %vm900_vm8, %v3180_v43 }
 0xf9a   : > { %v3163_v54 = vsel %vm832_vm7, %v3155_v53, %v4425_v42  ;;  %v3164_v52 = vsel %vm832_vm7, %v3156_v46, %v4426_v14  ;;  %4150 = vmatpush3.bf16.msra.mxu0 %v4476_v26 }
 0xf9b   : > { %v3181_v47 = vpack.c.bf16 %v3164_v52, %v3163_v54 }
 0xf9d   : > { %4144 = vmatmul.mubr.msk.bf16.gmra.mrb[60].mxu0 %vm900_vm8, %v3181_v47 }
0x1068   : > { %v4141_v58 = vpop.f32.mrb[56].mxu0 }
0x1069   : > { %v3281_v30 = vadd.f32 %v4141_v58, %v3783_v27  ;;  %v3272_v31 = vpop.f32.mrb[57].mxu0 }
0x106a   : > { %v3273_v32 = vadd.f32 %v3783_v27, %v3272_v31  ;;  %v4142_v33 = vpop.f32.mrb[58].mxu0 }
0x106b   : > { %v3284_v36 = vadd.f32 %v4142_v33, %v3783_v27  ;;  %v3275_v22 = vpop.f32.mrb[59].mxu0  ;;  %v3305_v24 = vmax.f32 %v3281_v30, 0.0 }
0x106c   : > { %v3276_v62 = vadd.f32 %v3783_v27, %v3275_v22  ;;  %v3303_v40 = vmax.f32 %v3273_v32, 0.0 }
0x106d   : > { %v3306_v0 = vmax.f32 %v3284_v36, 0.0 }
0x106e   : > { %v3304_v1 = vmax.f32 %v3276_v62, 0.0 }
0x106f   : > { %v3317_v28 = vpack.c.bf16 %v3306_v0, %v3305_v24 }
0x1070   : > { %v3316_v6 = vpack.c.bf16 %v3304_v1, %v3303_v40  ;;  %v4145_v16 = vpop.f32.mrb[60].mxu0 }
0x1071   : > { %v3297_v49 = vadd.f32 %v4145_v16, %v3783_v27  ;;  %v3288_v50 = vpop.f32.mrb[61].mxu0 }
0x1072   : > { %v3289_v39 = vadd.f32 %v3783_v27, %v3288_v50  ;;  %v4146_v51 = vpop.f32.mrb[62].mxu0  ;;  %4151 = vmatprep.mubr.msk.bf16.mxu0 %vm823_vm6, %v3316_v6 }
0x1073   : > { %v3300_v7 = vadd.f32 %v4146_v51, %v3783_v27  ;;  %v3291_v15 = vpop.f32.mrb[63].mxu0  ;;  %4152 = vmatmul.mubr.msk.bf16.vlgmr.msra.gmra.mrb[64].mxu0 %vm823_vm6, %v3317_v28  ;;  %v3309_v56 = vmax.f32 %v3297_v49, 0.0 }
0x1074   : > { %v3292_v55 = vadd.f32 %v3783_v27, %v3291_v15  ;;  %v3307_v34 = vmax.f32 %v3289_v39, 0.0 }
0x1075   : > { %v3310_v60 = vmax.f32 %v3300_v7, 0.0 }
0x1076   : > { %v3308_v17 = vmax.f32 %v3292_v55, 0.0 }
0x1077   : > { %v3319_v63 = vpack.c.bf16 %v3310_v60, %v3309_v56 }
0x1078   : > { %v3318_v35 = vpack.c.bf16 %v3308_v17, %v3307_v34 }
0x107a   : > { %4155 = vmatprep.mubr.msk.bf16.mxu1 %vm823_vm6, %v3318_v35 }
0x107b   : > { %4156 = vmatmul.mubr.msk.bf16.vlgmr.msra.gmra.mrb[48].mxu1 %vm823_vm6, %v3319_v63 }
0x107c   : > { %4160 = vmatpush3.bf16.msra.mxu1 %v4477_v45 }
0x107d   : > { %4161 = vmatprep.subr.bf16.mxu1 %v4478_v23 }
0x1080   : > { %4162 = vmatpush3.bf16.msra.mxu1 %v4478_v23 }
0x1146   : > { %v4153_v19 = vpop.f32.mrb[64].mxu0 }
0x1147   : > { %v3411_v21 = vadd.f32 %v4153_v19, %v5413_v25  ;;  %v3378_v3 = vpop.f32.mrb[65].mxu0 }
0x1148   : > { %v3409_v48 = vadd.f32 %v3378_v3, %v5415_v29  ;;  %v4154_v5 = vpop.f32.mrb[66].mxu0 }
0x1149   : > { %v3412_v57 = vadd.f32 %v4154_v5, %v5421_v37  ;;  %v3381_v59 = vpop.f32.mrb[67].mxu0  ;;  %v3427_v9 = vadd.f32 %v3805_v4, %v3411_v21 }
0x114a   : > { %v3410_v8 = vadd.f32 %v3381_v59, %v5423_v38  ;;  %v3425_v2 = vadd.f32 %v3805_v4, %v3409_v48 }
0x114b   : > { %v3428_v18 = vadd.f32 %v3805_v4, %v3412_v57 }
0x114c   : > { %v3426_v10 = vadd.f32 %v3805_v4, %v3410_v8 }
0x114d   : > { %v3438_v61 = vpack.c.bf16 %v3428_v18, %v3427_v9 }
0x114e   : > { %v3437_v11 = vpack.c.bf16 %v3426_v10, %v3425_v2  ;;  %v4157_v25 = vpop.f32.mrb[48].mxu1 }
0x114f   : > { %v3415_v43 = vadd.f32 %v4157_v25, %v5445_v13  ;;  %v3394_v12 = vpop.f32.mrb[49].mxu1 }
0x1150   : > { %v3413_v14 = vadd.f32 %v3394_v12, %v5447_v44  ;;  %v4158_v29 = vpop.f32.mrb[50].mxu1  ;;  %4163 = vmatprep.mubr.msk.bf16.mxu1 %vm823_vm6, %v3437_v11  ;;  %v3806_v44 = vld [vmem:[%s5573_s16] ss:$0 sm:$0xff] }
0x1151   : > { %v3416_v37 = vadd.f32 %v4158_v29, %v5450_v41  ;;  %v3397_v42 = vpop.f32.mrb[51].mxu1  ;;  %4164 = vmatmul.mubr.msk.bf16.vlgmr.msra.gmra.mrb[52].mxu1 %vm823_vm6, %v3438_v61  ;;  %v3431_v53 = vadd.f32 %v3805_v4, %v3415_v43 }
0x1152   : > { %v3414_v38 = vadd.f32 %v3397_v42, %v5453_v20  ;;  %v3429_v54 = vadd.f32 %v3805_v4, %v3413_v14 }
0x1153   : > { %v3432_v46 = vadd.f32 %v3805_v4, %v3416_v37 }
0x1154   : > { %v3430_v52 = vadd.f32 %v3805_v4, %v3414_v38 }
0x1155   : > { %v3440_v47 = vpack.c.bf16 %v3432_v46, %v3431_v53 }
0x1156   : > { %v3439_v13 = vpack.c.bf16 %v3430_v52, %v3429_v54 }
0x1158   : > { %4167 = vmatprep.mubr.msk.bf16.mxu1 %vm823_vm6, %v3439_v13 }
0x1159   : > { %4168 = vmatmul.mubr.msk.bf16.gmra.mrb[56].mxu1 %vm823_vm6, %v3440_v47 }
0x1224   : > { %v4165_v41 = vpop.f32.mrb[52].mxu1 }
0x1225   : > { %v3515_v20 = vadd.f32 %v4165_v41, %v3806_v44  ;;  %v3506_v26 = vpop.f32.mrb[53].mxu1 }
0x1226   : > { %v3507_v27 = vadd.f32 %v3806_v44, %v3506_v26  ;;  %v4166_v58 = vpop.f32.mrb[54].mxu1 }
0x1227   : > { %3539 = vst.msk [vmem:[%s548_s27 + $0x10] sm:$0xff] %vm579_vm1, %v3515_v20  ;;  %v3518_v30 = vadd.f32 %v4166_v58, %v3806_v44  ;;  %v3509_v31 = vpop.f32.mrb[55].mxu1 }
0x1228   : > { %3537 = vst.msk [vmem:[%s548_s27] sm:$0xff] %vm579_vm1, %v3507_v27  ;;  %v3510_v32 = vadd.f32 %v3806_v44, %v3509_v31 }
0x1229   : > { %3540 = vst.msk [vmem:[%s548_s27 + $0x18] sm:$0xff] %vm579_vm1, %v3518_v30 }
0x122a   : > { %3538 = vst.msk [vmem:[%s548_s27 + $0x8] sm:$0xff] %vm579_vm1, %v3510_v32 }
0x122c   : > { %v4169_v33 = vpop.f32.mrb[56].mxu1 }
0x122d   : > { %v3531_v36 = vadd.f32 %v4169_v33, %v3806_v44  ;;  %v3522_v22 = vpop.f32.mrb[57].mxu1 }
0x122e   : > { %v3523_v62 = vadd.f32 %v3806_v44, %v3522_v22  ;;  %v4170_v24 = vpop.f32.mrb[58].mxu1 }
0x122f   : > { %3543 = vst.msk [vmem:[%s548_s27 + $0x30] sm:$0xff] %vm579_vm1, %v3531_v36  ;;  %v3534_v0 = vadd.f32 %v4170_v24, %v3806_v44  ;;  %v3525_v40 = vpop.f32.mrb[59].mxu1 }
0x1230   : > { %3541 = vst.msk [vmem:[%s548_s27 + $0x20] sm:$0xff] %vm579_vm1, %v3523_v62  ;;  %v3526_v1 = vadd.f32 %v3806_v44, %v3525_v40 }
0x1231   : > { %3544 = vst.msk [vmem:[%s548_s27 + $0x38] sm:$0xff] %vm579_vm1, %v3534_v0 }
0x1232   : > { %3542 = vst.msk [vmem:[%s548_s27 + $0x28] sm:$0xff] %vm579_vm1, %v3526_v1 }
0x1233 PF: > { %s27_s24 = sadd.s32 1, %s4517_s24  }
0x1234   : > { %p24_p4 = scmp.ge.s32.totalorder %s27_s24, 4  }
0x1236   :  { %26 = sbr.rel (!%p24_p4) target bundleno = 3 (0x3), region = 134 }

</bundles_post_ra>
